<compile_context>
chip_gen: v6e
topology: v6e:2x2x1
jax: 0.10.0
libtpu: 0.0.40
codegen_flags: <defaults>
</compile_context>

<pallas_src>
import functools

import jax
import jax.numpy as jnp
from jax.experimental import pallas as pl
from jax.experimental.pallas import tpu as pltpu

EPS = 1e-5
LANE = 128                       # channel dims padded to multiples of this
MAX_BLOCK_M = 512                # row-tile cap (near HBM roofline per tiled data)
PADW = 8                         # sublane-tile-aligned left halo in the conv scratch
VMEM_LIMIT = 32 * 1024 * 1024    # safe scoped-VMEM request on v5e/v6e/v7x


# ---------------------------------------------------------------------------
# small helpers
# ---------------------------------------------------------------------------
def _round_up(v, m):
    return (v + m - 1) // m * m


def _pick_block_m(m, cap=MAX_BLOCK_M):
    """Largest multiple of 8 that divides m and is <= cap."""
    assert m % 8 == 0, f"rows (N*H*W) must be a multiple of 8, got {m}"
    best, bm = 8, 8
    while bm <= min(cap, m):
        if m % bm == 0:
            best = bm
        bm += 8
    return best


def _pad2(a, r, c):
    return jnp.pad(a, ((0, r - a.shape[0]), (0, c - a.shape[1])))


def _pad1(a, c):
    return jnp.pad(a, ((0, c - a.shape[0]),))


def _compiler_params(sem):
    return pltpu.CompilerParams(dimension_semantics=sem,
                                vmem_limit_bytes=VMEM_LIMIT)


def _finish_stats(psum, psq, count, gamma, beta):
    """Fold per-tile partial sums into BN scale/shift (biased var, PyTorch
    training-mode BatchNorm).  psum/psq are tiny (tiles, 8, C) arrays."""
    total = jnp.sum(psum, axis=(0, 1))
    total_sq = jnp.sum(psq, axis=(0, 1))
    mean = total / count
    var = jnp.maximum(total_sq / count - mean * mean, 0.0)
    scale = gamma / jnp.sqrt(var + EPS)
    shift = beta - mean * scale
    return scale[None, :], shift[None, :]


# ---------------------------------------------------------------------------
# kernels
# ---------------------------------------------------------------------------
def _stats_kernel(x_ref, sum_ref, sq_ref):
    """Per-channel partial sum / sum-of-squares of one row tile (sublane-grouped
    partials; the tiny cross-sublane finish happens in the wrapper)."""
    x = x_ref[...]
    c = x.shape[-1]
    xg = x.reshape(-1, 8, c)
    sum_ref[...] = jnp.sum(xg, axis=0)[None]
    sq_ref[...] = jnp.sum(xg * xg, axis=0)[None]


def _bn_relu_matmul_stats_kernel(x_ref, s_ref, b_ref, w_ref,
                                 z_ref, sum_ref, sq_ref, *, compute_dtype):
    """z = relu(x*scale + shift) @ W (1x1 conv) plus partial BN stats of z."""
    a = jnp.maximum(x_ref[...] * s_ref[...] + b_ref[...], 0.0)
    z = jnp.dot(a.astype(compute_dtype), w_ref[...],
                preferred_element_type=jnp.float32)
    z_ref[...] = z
    c = z.shape[-1]
    zg = z.reshape(-1, 8, c)
    sum_ref[...] = jnp.sum(zg, axis=0)[None]
    sq_ref[...] = jnp.sum(zg * zg, axis=0)[None]


def _bn_relu_conv3x3_stats_kernel(z1_ref, s_ref, b_ref, w_ref,
                                  z2_ref, sum_ref, sq_ref, apad_ref,
                                  *, compute_dtype):
    """relu(bn2(z1)) then 3x3 conv (stride 1, pad 1) on one batch image, plus
    partial BN stats of the conv output.

    The zero halo is built in a VMEM scratch (no HBM pad round trip).  The
    activation is stored at sublane offset PADW (tile-aligned) so all ref
    stores/loads are aligned; each tap takes a value-level static slice of an
    aligned slab and matmul-accumulates in f32."""
    _, h, w, c = z1_ref.shape
    s = s_ref[...].reshape(1, 1, c)
    b = b_ref[...].reshape(1, 1, c)
    a = jnp.maximum(z1_ref[0] * s + b, 0.0)              # (H, W, C) f32

    apad_ref[...] = jnp.zeros_like(apad_ref)             # halo = 0
    apad_ref[1:h + 1, PADW:PADW + w, :] = a               # aligned interior store

    acc = jnp.zeros((h * w, c), jnp.float32)
    for kh in range(3):
        slab = apad_ref[kh:kh + h, :, :]                  # aligned load
        for kw in range(3):
            lo = PADW - 1 + kw
            patch = jax.lax.slice(slab, (0, lo, 0), (h, lo + w, c))
            patch = patch.reshape(h * w, c).astype(compute_dtype)
            acc = acc + jnp.dot(patch, w_ref[kh * 3 + kw],
                                preferred_element_type=jnp.float32)

    z2_ref[...] = acc.reshape(1, h, w, c)
    zg = acc.reshape(-1, 8, c)
    sum_ref[...] = jnp.sum(zg, axis=0)[None]
    sq_ref[...] = jnp.sum(zg * zg, axis=0)[None]


def _bn_relu_matmul_residual_kernel(x_ref, s_ref, b_ref, w_ref, r_ref, o_ref,
                                    *, compute_dtype):
    """out = relu(x*scale + shift) @ W + residual  (final 1x1 conv + skip)."""
    a = jnp.maximum(x_ref[...] * s_ref[...] + b_ref[...], 0.0)
    o_ref[...] = (jnp.dot(a.astype(compute_dtype), w_ref[...],
                          preferred_element_type=jnp.float32) + r_ref[...])


# ---------------------------------------------------------------------------
# pallas_call wrappers
# ---------------------------------------------------------------------------
def _stats_call(x2d, bm):
    m, c = x2d.shape
    t = m // bm
    return pl.pallas_call(
        _stats_kernel,
        out_shape=(jax.ShapeDtypeStruct((t, 8, c), jnp.float32),
                   jax.ShapeDtypeStruct((t, 8, c), jnp.float32)),
        grid=(t,),
        in_specs=[pl.BlockSpec((bm, c), lambda i: (i, 0))],
        out_specs=(pl.BlockSpec((1, 8, c), lambda i: (i, 0, 0)),
                   pl.BlockSpec((1, 8, c), lambda i: (i, 0, 0))),
        compiler_params=_compiler_params(("parallel",)),
    )(x2d)


def _bn_relu_matmul_stats_call(x2d, scale, shift, w, bm, compute_dtype):
    m, cin = x2d.shape
    cout = w.shape[1]
    t = m // bm
    kern = functools.partial(_bn_relu_matmul_stats_kernel,
                             compute_dtype=compute_dtype)
    return pl.pallas_call(
        kern,
        out_shape=(jax.ShapeDtypeStruct((m, cout), jnp.float32),
                   jax.ShapeDtypeStruct((t, 8, cout), jnp.float32),
                   jax.ShapeDtypeStruct((t, 8, cout), jnp.float32)),
        grid=(t,),
        in_specs=[pl.BlockSpec((bm, cin), lambda i: (i, 0)),
                  pl.BlockSpec((1, cin), lambda i: (0, 0)),
                  pl.BlockSpec((1, cin), lambda i: (0, 0)),
                  pl.BlockSpec((cin, cout), lambda i: (0, 0))],   # resident W
        out_specs=(pl.BlockSpec((bm, cout), lambda i: (i, 0)),
                   pl.BlockSpec((1, 8, cout), lambda i: (i, 0, 0)),
                   pl.BlockSpec((1, 8, cout), lambda i: (i, 0, 0))),
        compiler_params=_compiler_params(("parallel",)),
    )(x2d, scale, shift, w)


def _bn_relu_conv3x3_stats_call(z1r, scale, shift, w9, compute_dtype):
    n, h, w, c = z1r.shape
    kern = functools.partial(_bn_relu_conv3x3_stats_kernel,
                             compute_dtype=compute_dtype)
    return pl.pallas_call(
        kern,
        out_shape=(jax.ShapeDtypeStruct((n, h, w, c), jnp.float32),
                   jax.ShapeDtypeStruct((n, 8, c), jnp.float32),
                   jax.ShapeDtypeStruct((n, 8, c), jnp.float32)),
        grid=(n,),
        in_specs=[pl.BlockSpec((1, h, w, c), lambda i: (i, 0, 0, 0)),
                  pl.BlockSpec((1, c), lambda i: (0, 0)),
                  pl.BlockSpec((1, c), lambda i: (0, 0)),
                  pl.BlockSpec((9, c, c), lambda i: (0, 0, 0))],  # resident W
        out_specs=(pl.BlockSpec((1, h, w, c), lambda i: (i, 0, 0, 0)),
                   pl.BlockSpec((1, 8, c), lambda i: (i, 0, 0)),
                   pl.BlockSpec((1, 8, c), lambda i: (i, 0, 0))),
        scratch_shapes=[pltpu.VMEM((h + 2, w + 2 * PADW, c), jnp.float32)],
        compiler_params=_compiler_params(("parallel",)),
    )(z1r, scale, shift, w9)


def _bn_relu_matmul_residual_call(x2d, scale, shift, w, res, bm, compute_dtype):
    m, cin = x2d.shape
    cout = w.shape[1]
    t = m // bm
    kern = functools.partial(_bn_relu_matmul_residual_kernel,
                             compute_dtype=compute_dtype)
    return pl.pallas_call(
        kern,
        out_shape=jax.ShapeDtypeStruct((m, cout), jnp.float32),
        grid=(t,),
        in_specs=[pl.BlockSpec((bm, cin), lambda i: (i, 0)),
                  pl.BlockSpec((1, cin), lambda i: (0, 0)),
                  pl.BlockSpec((1, cin), lambda i: (0, 0)),
                  pl.BlockSpec((cin, cout), lambda i: (0, 0)),
                  pl.BlockSpec((bm, cout), lambda i: (i, 0))],
        out_specs=pl.BlockSpec((bm, cout), lambda i: (i, 0)),
        compiler_params=_compiler_params(("parallel",)),
    )(x2d, scale, shift, w, res)


# ---------------------------------------------------------------------------
# Full forward pass (PreActBottleneck, stride=1, downsample=None)
# ---------------------------------------------------------------------------
def preact_bottleneck(x_nchw, params, stride=1, compute_dtype=jnp.bfloat16):
    assert stride == 1, "demo config: stride=1, downsample=None"
    # TODO(synk): stride != 1 and the optional self.downsample branch are not
    # implemented (the module's default construction uses neither).

    n, cin, h, w = x_nchw.shape
    p = params["w1"].shape[1]
    c4 = params["w3"].shape[1]
    assert c4 == cin, "residual add requires inplanes == planes * expansion"
    m = n * h * w
    assert m % 8 == 0 and (h * w) % 8 == 0

    cin_p = _round_up(cin, LANE)
    p_p = _round_up(p, LANE)
    c4_p = cin_p

    # NCHW -> NHWC -> (rows, channels); channels zero-padded to the lane width
    # so every matmul / store is lane-dense (padded weight rows/cols are zero,
    # so results are exact).  NOTE: in a full ResNet stack the NCHW<->NHWC
    # relayout should be done once at the model boundary, not per block.
    x = jnp.transpose(x_nchw, (0, 2, 3, 1)).astype(jnp.float32)
    x2d = jnp.pad(x.reshape(m, cin), ((0, 0), (0, cin_p - cin)))

    bm = _pick_block_m(m)

    # Padded / pre-cast parameters (done once per call).
    w1 = _pad2(params["w1"].astype(jnp.float32), cin_p, p_p).astype(compute_dtype)
    w2 = jnp.pad(params["w2"].astype(jnp.float32),
                 ((0, 0), (0, p_p - p), (0, p_p - p))).astype(compute_dtype)
    w3 = _pad2(params["w3"].astype(jnp.float32), p_p, c4_p).astype(compute_dtype)
    g1, be1 = _pad1(params["bn1_gamma"], cin_p), _pad1(params["bn1_beta"], cin_p)
    g2, be2 = _pad1(params["bn2_gamma"], p_p), _pad1(params["bn2_beta"], p_p)
    g3, be3 = _pad1(params["bn3_gamma"], p_p), _pad1(params["bn3_beta"], p_p)

    # bn1 statistics of x (single fused sum / sum-of-squares pass).
    ps, pq = _stats_call(x2d, bm)
    s1, t1 = _finish_stats(ps, pq, m, g1, be1)

    # bn1 + relu + conv1 (1x1), bn2 stats of z1 fused in.
    z1, ps, pq = _bn_relu_matmul_stats_call(x2d, s1, t1, w1, bm, compute_dtype)
    s2, t2 = _finish_stats(ps, pq, m, g2, be2)

    # bn2 + relu + conv2 (3x3, pad 1), bn3 stats of z2 fused in.
    z1r = z1.reshape(n, h, w, p_p)
    z2r, ps, pq = _bn_relu_conv3x3_stats_call(z1r, s2, t2, w2, compute_dtype)
    s3, t3 = _finish_stats(ps, pq, m, g3, be3)

    # bn3 + relu + conv3 (1x1, expansion) + residual add, one kernel.
    z2 = z2r.reshape(m, p_p)
    out = _bn_relu_matmul_residual_call(z2, s3, t3, w3, x2d, bm, compute_dtype)

    out = out[:, :c4].reshape(n, h, w, c4)
    return jnp.transpose(out, (0, 3, 1, 2))                  # NHWC -> NCHW


# ---------------------------------------------------------------------------
# Pure-JAX reference (for sanity check)
# ---------------------------------------------------------------------------
def reference_forward(x, params, stride=1):
    def bn(t, g, b):
        mean = t.mean(axis=(0, 2, 3), keepdims=True)
        var = t.var(axis=(0, 2, 3), keepdims=True)
        return (t - mean) / jnp.sqrt(var + EPS) * g.reshape(1, -1, 1, 1) \
            + b.reshape(1, -1, 1, 1)

    dn = ("NCHW", "OIHW", "NCHW")
    p = params["w1"].shape[1]
    out = jax.nn.relu(bn(x, params["bn1_gamma"], params["bn1_beta"]))
    w1 = jnp.transpose(params["w1"], (1, 0))[:, :, None, None]
    out = jax.lax.conv_general_dilated(out, w1, (1, 1), "VALID",
                                       dimension_numbers=dn)
    out = jax.nn.relu(bn(out, params["bn2_gamma"], params["bn2_beta"]))
    w2 = jnp.transpose(params["w2"].reshape(3, 3, p, p), (3, 2, 0, 1))
    out = jax.lax.conv_general_dilated(out, w2, (stride, stride),
                                       ((1, 1), (1, 1)), dimension_numbers=dn)
    out = jax.nn.relu(bn(out, params["bn3_gamma"], params["bn3_beta"]))
    w3 = jnp.transpose(params["w3"], (1, 0))[:, :, None, None]
    out = jax.lax.conv_general_dilated(out, w3, (1, 1), "VALID",
                                       dimension_numbers=dn)
    return out + x


# ---------------------------------------------------------------------------
if __name__ == "__main__":
    inplanes, planes = 16, 4          # expansion=4 -> inplanes == planes * 4
    n, h, w = 2, 8, 8

    keys = jax.random.split(jax.random.PRNGKey(0), 10)
    params = {
        "bn1_gamma": 1.0 + 0.1 * jax.random.normal(keys[0], (inplanes,)),
        "bn1_beta": 0.1 * jax.random.normal(keys[1], (inplanes,)),
        "w1": 0.1 * jax.random.normal(keys[2], (inplanes, planes)),      # (Cin, P)
        "bn2_gamma": 1.0 + 0.1 * jax.random.normal(keys[3], (planes,)),
        "bn2_beta": 0.1 * jax.random.normal(keys[4], (planes,)),
        "w2": 0.1 * jax.random.normal(keys[5], (9, planes, planes)),     # (kh*3+kw, Cin, Cout)
        "bn3_gamma": 1.0 + 0.1 * jax.random.normal(keys[6], (planes,)),
        "bn3_beta": 0.1 * jax.random.normal(keys[7], (planes,)),
        "w3": 0.1 * jax.random.normal(keys[8], (planes, planes * 4)),    # (P, 4P)
    }
    x = jax.random.normal(keys[9], (n, inplanes, h, w), dtype=jnp.float32)

    ref = jax.block_until_ready(reference_forward(x, params, stride=1))

    # f32 compute path: bit-for-bit-class check against the XLA reference.
    fwd_f32 = jax.jit(functools.partial(preact_bottleneck, stride=1,
                                        compute_dtype=jnp.float32))
    out_f32 = jax.block_until_ready(fwd_f32(x, params))
    assert out_f32.shape == (n, inplanes, h, w)
    assert jnp.allclose(out_f32, ref, rtol=2e-4, atol=3e-3), \
        f"f32 max abs diff {jnp.max(jnp.abs(out_f32 - ref))}"

    # bf16 MXU-operand fast path (v6e/v7x); f32 accumulation keeps accuracy.
    fwd_bf16 = jax.jit(functools.partial(preact_bottleneck, stride=1,
                                         compute_dtype=jnp.bfloat16))
    out_bf16 = jax.block_until_ready(fwd_bf16(x, params))
    assert jnp.allclose(out_bf16, ref, rtol=5e-2, atol=1e-1), \
        f"bf16 max abs diff {jnp.max(jnp.abs(out_bf16 - ref))}"

    print("KERNEL_OK")
</pallas_src>

<mosaic_0001>
module attributes {stable_mosaic.version = 11 : i64} {
  func.func @_stats_kernel(%arg0: i32, %arg1: memref<128x128xf32, #tpu.memory_space<vmem>>, %arg2: memref<1x8x128xf32, #tpu.memory_space<vmem>>, %arg3: memref<1x8x128xf32, #tpu.memory_space<vmem>>) attributes {dimension_semantics = [#tpu.dimension_semantics<parallel>], iteration_bounds = array<i64: 1>, scalar_prefetch = 0 : i64, scratch_operands = 0 : i64, tpu.core_type = #tpu.core_type<tc>, window_params = [{transform_indices = @transform_0, window_bounds = array<i64: 128, 128>}, {transform_indices = @transform_1, window_bounds = array<i64: 1, 8, 128>}, {transform_indices = @transform_2, window_bounds = array<i64: 1, 8, 128>}]} {
    %c0 = arith.constant 0 : index
    %c0_0 = arith.constant 0 : index
    %0 = vector.load %arg1[%c0, %c0_0] : memref<128x128xf32, #tpu.memory_space<vmem>>, vector<128x128xf32>
    %1 = vector.shape_cast %0 : vector<128x128xf32> to vector<16x8x128xf32>
    %cst = arith.constant dense<0.000000e+00> : vector<8x128xf32>
    %2 = vector.multi_reduction <add>, %1, %cst [0] : vector<16x8x128xf32> to vector<8x128xf32>
    %3 = vector.shape_cast %2 : vector<8x128xf32> to vector<1x8x128xf32>
    %c0_1 = arith.constant 0 : index
    %c0_2 = arith.constant 0 : index
    %c0_3 = arith.constant 0 : index
    %4 = vector.load %arg2[%c0_1, %c0_2, %c0_3] : memref<1x8x128xf32, #tpu.memory_space<vmem>>, vector<1x8x128xf32>
    tpu.vector_store %arg2[%c0_1, %c0_2, %c0_3], %3 {strides = array<i32>} : memref<1x8x128xf32, #tpu.memory_space<vmem>>, vector<1x8x128xf32>,
    %5 = arith.mulf %1, %1 : vector<16x8x128xf32>
    %cst_4 = arith.constant dense<0.000000e+00> : vector<8x128xf32>
    %6 = vector.multi_reduction <add>, %5, %cst_4 [0] : vector<16x8x128xf32> to vector<8x128xf32>
    %7 = vector.shape_cast %6 : vector<8x128xf32> to vector<1x8x128xf32>
    %c0_5 = arith.constant 0 : index
    %c0_6 = arith.constant 0 : index
    %c0_7 = arith.constant 0 : index
    %8 = vector.load %arg3[%c0_5, %c0_6, %c0_7] : memref<1x8x128xf32, #tpu.memory_space<vmem>>, vector<1x8x128xf32>
    tpu.vector_store %arg3[%c0_5, %c0_6, %c0_7], %7 {strides = array<i32>} : memref<1x8x128xf32, #tpu.memory_space<vmem>>, vector<1x8x128xf32>,
    return
  }
  func.func @transform_0(%arg0: i32) -> (i32, i32) {
    %c0_i32 = arith.constant 0 : i32
    %c0_i32_0 = arith.constant 0 : i32
    return %arg0, %c0_i32 : i32, i32
  }
  func.func @transform_1(%arg0: i32) -> (i32, i32, i32) {
    %c0_i32 = arith.constant 0 : i32
    %c0_i32_0 = arith.constant 0 : i32
    %c0_i32_1 = arith.constant 0 : i32
    return %arg0, %c0_i32, %c0_i32_0 : i32, i32, i32
  }
  func.func @transform_2(%arg0: i32) -> (i32, i32, i32) {
    %c0_i32 = arith.constant 0 : i32
    %c0_i32_0 = arith.constant 0 : i32
    %c0_i32_1 = arith.constant 0 : i32
    return %arg0, %c0_i32, %c0_i32_0 : i32, i32, i32
  }
}

module attributes {stable_mosaic.version = 11 : i64} {
  func.func @_bn_relu_matmul_stats_kernel(%arg0: i32, %arg1: memref<128x128xf32, #tpu.memory_space<vmem>>, %arg2: memref<1x128xf32, #tpu.memory_space<vmem>>, %arg3: memref<1x128xf32, #tpu.memory_space<vmem>>, %arg4: memref<128x128xf32, #tpu.memory_space<vmem>>, %arg5: memref<128x128xf32, #tpu.memory_space<vmem>>, %arg6: memref<1x8x128xf32, #tpu.memory_space<vmem>>, %arg7: memref<1x8x128xf32, #tpu.memory_space<vmem>>) attributes {dimension_semantics = [#tpu.dimension_semantics<parallel>], iteration_bounds = array<i64: 1>, scalar_prefetch = 0 : i64, scratch_operands = 0 : i64, tpu.core_type = #tpu.core_type<tc>, window_params = [{transform_indices = @transform_0, window_bounds = array<i64: 128, 128>}, {pipeline_mode = #tpu.pipeline_mode<synchronous>, transform_indices = @transform_1, window_bounds = array<i64: 1, 128>}, {pipeline_mode = #tpu.pipeline_mode<synchronous>, transform_indices = @transform_2, window_bounds = array<i64: 1, 128>}, {pipeline_mode = #tpu.pipeline_mode<synchronous>, transform_indices = @transform_3, window_bounds = array<i64: 128, 128>}, {transform_indices = @transform_4, window_bounds = array<i64: 128, 128>}, {transform_indices = @transform_5, window_bounds = array<i64: 1, 8, 128>}, {transform_indices = @transform_6, window_bounds = array<i64: 1, 8, 128>}]} {
    %c0 = arith.constant 0 : index
    %c0_0 = arith.constant 0 : index
    %0 = vector.load %arg1[%c0, %c0_0] : memref<128x128xf32, #tpu.memory_space<vmem>>, vector<128x128xf32>
    %c0_1 = arith.constant 0 : index
    %c0_2 = arith.constant 0 : index
    %1 = vector.load %arg2[%c0_1, %c0_2] : memref<1x128xf32, #tpu.memory_space<vmem>>, vector<1x128xf32>
    %2 = vector.broadcast %1 : vector<1x128xf32> to vector<128x128xf32>
    %3 = arith.mulf %0, %2 : vector<128x128xf32>
    %c0_3 = arith.constant 0 : index
    %c0_4 = arith.constant 0 : index
    %4 = vector.load %arg3[%c0_3, %c0_4] : memref<1x128xf32, #tpu.memory_space<vmem>>, vector<1x128xf32>
    %5 = vector.broadcast %4 : vector<1x128xf32> to vector<128x128xf32>
    %6 = arith.addf %3, %5 : vector<128x128xf32>
    %cst = arith.constant 0.000000e+00 : f32
    %7 = vector.broadcast %cst : f32 to vector<128x128xf32>
    %8 = arith.maximumf %6, %7 : vector<128x128xf32>
    %c0_5 = arith.constant 0 : index
    %c0_6 = arith.constant 0 : index
    %9 = vector.load %arg4[%c0_5, %c0_6] : memref<128x128xf32, #tpu.memory_space<vmem>>, vector<128x128xf32>
    %cst_7 = arith.constant dense<0.000000e+00> : vector<128x128xf32>
    %10 = tpu.matmul %8, %9, %cst_7 {dimension_numbers = #tpu.dot_dimension_numbers<[1], [0], [0], [1], [0, 0, 1, 1], [], []>} : vector<128x128xf32>, vector<128x128xf32>, vector<128x128xf32> -> vector<128x128xf32>
    %c0_8 = arith.constant 0 : index
    %c0_9 = arith.constant 0 : index
    %11 = vector.load %arg5[%c0_8, %c0_9] : memref<128x128xf32, #tpu.memory_space<vmem>>, vector<128x128xf32>
    tpu.vector_store %arg5[%c0_8, %c0_9], %10 {strides = array<i32>} : memref<128x128xf32, #tpu.memory_space<vmem>>, vector<128x128xf32>,
    %12 = vector.shape_cast %10 : vector<128x128xf32> to vector<16x8x128xf32>
    %cst_10 = arith.constant dense<0.000000e+00> : vector<8x128xf32>
    %13 = vector.multi_reduction <add>, %12, %cst_10 [0] : vector<16x8x128xf32> to vector<8x128xf32>
    %14 = vector.shape_cast %13 : vector<8x128xf32> to vector<1x8x128xf32>
    %c0_11 = arith.constant 0 : index
    %c0_12 = arith.constant 0 : index
    %c0_13 = arith.constant 0 : index
    %15 = vector.load %arg6[%c0_11, %c0_12, %c0_13] : memref<1x8x128xf32, #tpu.memory_space<vmem>>, vector<1x8x128xf32>
    tpu.vector_store %arg6[%c0_11, %c0_12, %c0_13], %14 {strides = array<i32>} : memref<1x8x128xf32, #tpu.memory_space<vmem>>, vector<1x8x128xf32>,
    %16 = arith.mulf %12, %12 : vector<16x8x128xf32>
    %cst_14 = arith.constant dense<0.000000e+00> : vector<8x128xf32>
    %17 = vector.multi_reduction <add>, %16, %cst_14 [0] : vector<16x8x128xf32> to vector<8x128xf32>
    %18 = vector.shape_cast %17 : vector<8x128xf32> to vector<1x8x128xf32>
    %c0_15 = arith.constant 0 : index
    %c0_16 = arith.constant 0 : index
    %c0_17 = arith.constant 0 : index
    %19 = vector.load %arg7[%c0_15, %c0_16, %c0_17] : memref<1x8x128xf32, #tpu.memory_space<vmem>>, vector<1x8x128xf32>
    tpu.vector_store %arg7[%c0_15, %c0_16, %c0_17], %18 {strides = array<i32>} : memref<1x8x128xf32, #tpu.memory_space<vmem>>, vector<1x8x128xf32>,
    return
  }
  func.func @transform_0(%arg0: i32) -> (i32, i32) {
    %c0_i32 = arith.constant 0 : i32
    %c0_i32_0 = arith.constant 0 : i32
    return %arg0, %c0_i32 : i32, i32
  }
  func.func @transform_1(%arg0: i32) -> (i32, i32) {
    %c0_i32 = arith.constant 0 : i32
    %c0_i32_0 = arith.constant 0 : i32
    %c0_i32_1 = arith.constant 0 : i32
    return %c0_i32, %c0_i32_0 : i32, i32
  }
  func.func @transform_2(%arg0: i32) -> (i32, i32) {
    %c0_i32 = arith.constant 0 : i32
    %c0_i32_0 = arith.constant 0 : i32
    %c0_i32_1 = arith.constant 0 : i32
    return %c0_i32, %c0_i32_0 : i32, i32
  }
  func.func @transform_3(%arg0: i32) -> (i32, i32) {
    %c0_i32 = arith.constant 0 : i32
    %c0_i32_0 = arith.constant 0 : i32
    %c0_i32_1 = arith.constant 0 : i32
    return %c0_i32, %c0_i32_0 : i32, i32
  }
  func.func @transform_4(%arg0: i32) -> (i32, i32) {
    %c0_i32 = arith.constant 0 : i32
    %c0_i32_0 = arith.constant 0 : i32
    return %arg0, %c0_i32 : i32, i32
  }
  func.func @transform_5(%arg0: i32) -> (i32, i32, i32) {
    %c0_i32 = arith.constant 0 : i32
    %c0_i32_0 = arith.constant 0 : i32
    %c0_i32_1 = arith.constant 0 : i32
    return %arg0, %c0_i32, %c0_i32_0 : i32, i32, i32
  }
  func.func @transform_6(%arg0: i32) -> (i32, i32, i32) {
    %c0_i32 = arith.constant 0 : i32
    %c0_i32_0 = arith.constant 0 : i32
    %c0_i32_1 = arith.constant 0 : i32
    return %arg0, %c0_i32, %c0_i32_0 : i32, i32, i32
  }
}

module attributes {stable_mosaic.version = 11 : i64} {
  func.func @_bn_relu_conv3x3_stats_kernel(%arg0: i32, %arg1: memref<1x8x8x128xf32, #tpu.memory_space<vmem>>, %arg2: memref<1x128xf32, #tpu.memory_space<vmem>>, %arg3: memref<1x128xf32, #tpu.memory_space<vmem>>, %arg4: memref<9x128x128xf32, #tpu.memory_space<vmem>>, %arg5: memref<1x8x8x128xf32, #tpu.memory_space<vmem>>, %arg6: memref<1x8x128xf32, #tpu.memory_space<vmem>>, %arg7: memref<1x8x128xf32, #tpu.memory_space<vmem>>, %arg8: memref<10x24x128xf32, #tpu.memory_space<vmem>>) attributes {dimension_semantics = [#tpu.dimension_semantics<parallel>], iteration_bounds = array<i64: 2>, scalar_prefetch = 0 : i64, scratch_operands = 1 : i64, tpu.core_type = #tpu.core_type<tc>, window_params = [{transform_indices = @transform_0, window_bounds = array<i64: 1, 8, 8, 128>}, {pipeline_mode = #tpu.pipeline_mode<synchronous>, transform_indices = @transform_1, window_bounds = array<i64: 1, 128>}, {pipeline_mode = #tpu.pipeline_mode<synchronous>, transform_indices = @transform_2, window_bounds = array<i64: 1, 128>}, {pipeline_mode = #tpu.pipeline_mode<synchronous>, transform_indices = @transform_3, window_bounds = array<i64: 9, 128, 128>}, {transform_indices = @transform_4, window_bounds = array<i64: 1, 8, 8, 128>}, {transform_indices = @transform_5, window_bounds = array<i64: 1, 8, 128>}, {transform_indices = @transform_6, window_bounds = array<i64: 1, 8, 128>}]} {
    %c0 = arith.constant 0 : index
    %c0_0 = arith.constant 0 : index
    %0 = vector.load %arg2[%c0, %c0_0] : memref<1x128xf32, #tpu.memory_space<vmem>>, vector<1x128xf32>
    %1 = vector.shape_cast %0 : vector<1x128xf32> to vector<1x1x128xf32>
    %c0_1 = arith.constant 0 : index
    %c0_2 = arith.constant 0 : index
    %2 = vector.load %arg3[%c0_1, %c0_2] : memref<1x128xf32, #tpu.memory_space<vmem>>, vector<1x128xf32>
    %3 = vector.shape_cast %2 : vector<1x128xf32> to vector<1x1x128xf32>
    %c0_3 = arith.constant 0 : index
    %c0_4 = arith.constant 0 : index
    %c0_5 = arith.constant 0 : index
    %c0_6 = arith.constant 0 : index
    %4 = vector.load %arg1[%c0_3, %c0_4, %c0_5, %c0_6] : memref<1x8x8x128xf32, #tpu.memory_space<vmem>>, vector<1x8x8x128xf32>
    %5 = vector.shape_cast %4 : vector<1x8x8x128xf32> to vector<8x8x128xf32>
    %6 = vector.broadcast %1 : vector<1x1x128xf32> to vector<8x8x128xf32>
    %7 = arith.mulf %5, %6 : vector<8x8x128xf32>
    %8 = vector.broadcast %3 : vector<1x1x128xf32> to vector<8x8x128xf32>
    %9 = arith.addf %7, %8 : vector<8x8x128xf32>
    %cst = arith.constant 0.000000e+00 : f32
    %10 = vector.broadcast %cst : f32 to vector<8x8x128xf32>
    %11 = arith.maximumf %9, %10 : vector<8x8x128xf32>
    %cst_7 = arith.constant 0.000000e+00 : f32
    %12 = vector.broadcast %cst_7 : f32 to vector<10x24x128xf32>
    %c0_8 = arith.constant 0 : index
    %c0_9 = arith.constant 0 : index
    %c0_10 = arith.constant 0 : index
    %13 = vector.load %arg8[%c0_8, %c0_9, %c0_10] : memref<10x24x128xf32, #tpu.memory_space<vmem>>, vector<10x24x128xf32>
    tpu.vector_store %arg8[%c0_8, %c0_9, %c0_10], %12 {strides = array<i32>} : memref<10x24x128xf32, #tpu.memory_space<vmem>>, vector<10x24x128xf32>,
    %c1 = arith.constant 1 : index
    %c8 = arith.constant 8 : index
    %c0_11 = arith.constant 0 : index
    %14 = vector.load %arg8[%c1, %c8, %c0_11] : memref<10x24x128xf32, #tpu.memory_space<vmem>>, vector<8x8x128xf32>
    tpu.vector_store %arg8[%c1, %c8, %c0_11], %11 {strides = array<i32>} : memref<10x24x128xf32, #tpu.memory_space<vmem>>, vector<8x8x128xf32>,
    %cst_12 = arith.constant 0.000000e+00 : f32
    %15 = vector.broadcast %cst_12 : f32 to vector<64x128xf32>
    %c0_13 = arith.constant 0 : index
    %c0_14 = arith.constant 0 : index
    %c0_15 = arith.constant 0 : index
    %16 = vector.load %arg8[%c0_13, %c0_14, %c0_15] : memref<10x24x128xf32, #tpu.memory_space<vmem>>, vector<8x24x128xf32>
    %17 = vector.extract_strided_slice %16 {offsets = [0, 7, 0], sizes = [8, 8, 128], strides = [1, 1, 1]} : vector<8x24x128xf32> to vector<8x8x128xf32>
    %18 = vector.shape_cast %17 : vector<8x8x128xf32> to vector<64x128xf32>
    %c0_16 = arith.constant 0 : index
    %c0_17 = arith.constant 0 : index
    %c0_18 = arith.constant 0 : index
    %19 = vector.load %arg4[%c0_16, %c0_17, %c0_18] : memref<9x128x128xf32, #tpu.memory_space<vmem>>, vector<1x128x128xf32>
    %20 = vector.shape_cast %19 : vector<1x128x128xf32> to vector<128x128xf32>
    %cst_19 = arith.constant dense<0.000000e+00> : vector<64x128xf32>
    %21 = tpu.matmul %18, %20, %cst_19 {dimension_numbers = #tpu.dot_dimension_numbers<[1], [0], [0], [1], [0, 0, 1, 1], [], []>} : vector<64x128xf32>, vector<128x128xf32>, vector<64x128xf32> -> vector<64x128xf32>
    %22 = arith.addf %15, %21 : vector<64x128xf32>
    %23 = vector.extract_strided_slice %16 {offsets = [0, 8, 0], sizes = [8, 8, 128], strides = [1, 1, 1]} : vector<8x24x128xf32> to vector<8x8x128xf32>
    %24 = vector.shape_cast %23 : vector<8x8x128xf32> to vector<64x128xf32>
    %c1_20 = arith.constant 1 : index
    %c0_21 = arith.constant 0 : index
    %c0_22 = arith.constant 0 : index
    %25 = vector.load %arg4[%c1_20, %c0_21, %c0_22] : memref<9x128x128xf32, #tpu.memory_space<vmem>>, vector<1x128x128xf32>
    %26 = vector.shape_cast %25 : vector<1x128x128xf32> to vector<128x128xf32>
    %cst_23 = arith.constant dense<0.000000e+00> : vector<64x128xf32>
    %27 = tpu.matmul %24, %26, %cst_23 {dimension_numbers = #tpu.dot_dimension_numbers<[1], [0], [0], [1], [0, 0, 1, 1], [], []>} : vector<64x128xf32>, vector<128x128xf32>, vector<64x128xf32> -> vector<64x128xf32>
    %28 = arith.addf %22, %27 : vector<64x128xf32>
    %29 = vector.extract_strided_slice %16 {offsets = [0, 9, 0], sizes = [8, 8, 128], strides = [1, 1, 1]} : vector<8x24x128xf32> to vector<8x8x128xf32>
    %30 = vector.shape_cast %29 : vector<8x8x128xf32> to vector<64x128xf32>
    %c2 = arith.constant 2 : index
    %c0_24 = arith.constant 0 : index
    %c0_25 = arith.constant 0 : index
    %31 = vector.load %arg4[%c2, %c0_24, %c0_25] : memref<9x128x128xf32, #tpu.memory_space<vmem>>, vector<1x128x128xf32>
    %32 = vector.shape_cast %31 : vector<1x128x128xf32> to vector<128x128xf32>
    %cst_26 = arith.constant dense<0.000000e+00> : vector<64x128xf32>
    %33 = tpu.matmul %30, %32, %cst_26 {dimension_numbers = #tpu.dot_dimension_numbers<[1], [0], [0], [1], [0, 0, 1, 1], [], []>} : vector<64x128xf32>, vector<128x128xf32>, vector<64x128xf32> -> vector<64x128xf32>
    %34 = arith.addf %28, %33 : vector<64x128xf32>
    %c1_27 = arith.constant 1 : index
    %c0_28 = arith.constant 0 : index
    %c0_29 = arith.constant 0 : index
    %35 = vector.load %arg8[%c1_27, %c0_28, %c0_29] : memref<10x24x128xf32, #tpu.memory_space<vmem>>, vector<8x24x128xf32>
    %36 = vector.extract_strided_slice %35 {offsets = [0, 7, 0], sizes = [8, 8, 128], strides = [1, 1, 1]} : vector<8x24x128xf32> to vector<8x8x128xf32>
    %37 = vector.shape_cast %36 : vector<8x8x128xf32> to vector<64x128xf32>
    %c3 = arith.constant 3 : index
    %c0_30 = arith.constant 0 : index
    %c0_31 = arith.constant 0 : index
    %38 = vector.load %arg4[%c3, %c0_30, %c0_31] : memref<9x128x128xf32, #tpu.memory_space<vmem>>, vector<1x128x128xf32>
    %39 = vector.shape_cast %38 : vector<1x128x128xf32> to vector<128x128xf32>
    %cst_32 = arith.constant dense<0.000000e+00> : vector<64x128xf32>
    %40 = tpu.matmul %37, %39, %cst_32 {dimension_numbers = #tpu.dot_dimension_numbers<[1], [0], [0], [1], [0, 0, 1, 1], [], []>} : vector<64x128xf32>, vector<128x128xf32>, vector<64x128xf32> -> vector<64x128xf32>
    %41 = arith.addf %34, %40 : vector<64x128xf32>
    %42 = vector.extract_strided_slice %35 {offsets = [0, 8, 0], sizes = [8, 8, 128], strides = [1, 1, 1]} : vector<8x24x128xf32> to vector<8x8x128xf32>
    %43 = vector.shape_cast %42 : vector<8x8x128xf32> to vector<64x128xf32>
    %c4 = arith.constant 4 : index
    %c0_33 = arith.constant 0 : index
    %c0_34 = arith.constant 0 : index
    %44 = vector.load %arg4[%c4, %c0_33, %c0_34] : memref<9x128x128xf32, #tpu.memory_space<vmem>>, vector<1x128x128xf32>
    %45 = vector.shape_cast %44 : vector<1x128x128xf32> to vector<128x128xf32>
    %cst_35 = arith.constant dense<0.000000e+00> : vector<64x128xf32>
    %46 = tpu.matmul %43, %45, %cst_35 {dimension_numbers = #tpu.dot_dimension_numbers<[1], [0], [0], [1], [0, 0, 1, 1], [], []>} : vector<64x128xf32>, vector<128x128xf32>, vector<64x128xf32> -> vector<64x128xf32>
    %47 = arith.addf %41, %46 : vector<64x128xf32>
    %48 = vector.extract_strided_slice %35 {offsets = [0, 9, 0], sizes = [8, 8, 128], strides = [1, 1, 1]} : vector<8x24x128xf32> to vector<8x8x128xf32>
    %49 = vector.shape_cast %48 : vector<8x8x128xf32> to vector<64x128xf32>
    %c5 = arith.constant 5 : index
    %c0_36 = arith.constant 0 : index
    %c0_37 = arith.constant 0 : index
    %50 = vector.load %arg4[%c5, %c0_36, %c0_37] : memref<9x128x128xf32, #tpu.memory_space<vmem>>, vector<1x128x128xf32>
    %51 = vector.shape_cast %50 : vector<1x128x128xf32> to vector<128x128xf32>
    %cst_38 = arith.constant dense<0.000000e+00> : vector<64x128xf32>
    %52 = tpu.matmul %49, %51, %cst_38 {dimension_numbers = #tpu.dot_dimension_numbers<[1], [0], [0], [1], [0, 0, 1, 1], [], []>} : vector<64x128xf32>, vector<128x128xf32>, vector<64x128xf32> -> vector<64x128xf32>
    %53 = arith.addf %47, %52 : vector<64x128xf32>
    %c2_39 = arith.constant 2 : index
    %c0_40 = arith.constant 0 : index
    %c0_41 = arith.constant 0 : index
    %54 = vector.load %arg8[%c2_39, %c0_40, %c0_41] : memref<10x24x128xf32, #tpu.memory_space<vmem>>, vector<8x24x128xf32>
    %55 = vector.extract_strided_slice %54 {offsets = [0, 7, 0], sizes = [8, 8, 128], strides = [1, 1, 1]} : vector<8x24x128xf32> to vector<8x8x128xf32>
    %56 = vector.shape_cast %55 : vector<8x8x128xf32> to vector<64x128xf32>
    %c6 = arith.constant 6 : index
    %c0_42 = arith.constant 0 : index
    %c0_43 = arith.constant 0 : index
    %57 = vector.load %arg4[%c6, %c0_42, %c0_43] : memref<9x128x128xf32, #tpu.memory_space<vmem>>, vector<1x128x128xf32>
    %58 = vector.shape_cast %57 : vector<1x128x128xf32> to vector<128x128xf32>
    %cst_44 = arith.constant dense<0.000000e+00> : vector<64x128xf32>
    %59 = tpu.matmul %56, %58, %cst_44 {dimension_numbers = #tpu.dot_dimension_numbers<[1], [0], [0], [1], [0, 0, 1, 1], [], []>} : vector<64x128xf32>, vector<128x128xf32>, vector<64x128xf32> -> vector<64x128xf32>
    %60 = arith.addf %53, %59 : vector<64x128xf32>
    %61 = vector.extract_strided_slice %54 {offsets = [0, 8, 0], sizes = [8, 8, 128], strides = [1, 1, 1]} : vector<8x24x128xf32> to vector<8x8x128xf32>
    %62 = vector.shape_cast %61 : vector<8x8x128xf32> to vector<64x128xf32>
    %c7 = arith.constant 7 : index
    %c0_45 = arith.constant 0 : index
    %c0_46 = arith.constant 0 : index
    %63 = vector.load %arg4[%c7, %c0_45, %c0_46] : memref<9x128x128xf32, #tpu.memory_space<vmem>>, vector<1x128x128xf32>
    %64 = vector.shape_cast %63 : vector<1x128x128xf32> to vector<128x128xf32>
    %cst_47 = arith.constant dense<0.000000e+00> : vector<64x128xf32>
    %65 = tpu.matmul %62, %64, %cst_47 {dimension_numbers = #tpu.dot_dimension_numbers<[1], [0], [0], [1], [0, 0, 1, 1], [], []>} : vector<64x128xf32>, vector<128x128xf32>, vector<64x128xf32> -> vector<64x128xf32>
    %66 = arith.addf %60, %65 : vector<64x128xf32>
    %67 = vector.extract_strided_slice %54 {offsets = [0, 9, 0], sizes = [8, 8, 128], strides = [1, 1, 1]} : vector<8x24x128xf32> to vector<8x8x128xf32>
    %68 = vector.shape_cast %67 : vector<8x8x128xf32> to vector<64x128xf32>
    %c8_48 = arith.constant 8 : index
    %c0_49 = arith.constant 0 : index
    %c0_50 = arith.constant 0 : index
    %69 = vector.load %arg4[%c8_48, %c0_49, %c0_50] : memref<9x128x128xf32, #tpu.memory_space<vmem>>, vector<1x128x128xf32>
    %70 = vector.shape_cast %69 : vector<1x128x128xf32> to vector<128x128xf32>
    %cst_51 = arith.constant dense<0.000000e+00> : vector<64x128xf32>
    %71 = tpu.matmul %68, %70, %cst_51 {dimension_numbers = #tpu.dot_dimension_numbers<[1], [0], [0], [1], [0, 0, 1, 1], [], []>} : vector<64x128xf32>, vector<128x128xf32>, vector<64x128xf32> -> vector<64x128xf32>
    %72 = arith.addf %66, %71 : vector<64x128xf32>
    %73 = vector.shape_cast %72 : vector<64x128xf32> to vector<1x8x8x128xf32>
    %c0_52 = arith.constant 0 : index
    %c0_53 = arith.constant 0 : index
    %c0_54 = arith.constant 0 : index
    %c0_55 = arith.constant 0 : index
    %74 = vector.load %arg5[%c0_52, %c0_53, %c0_54, %c0_55] : memref<1x8x8x128xf32, #tpu.memory_space<vmem>>, vector<1x8x8x128xf32>
    tpu.vector_store %arg5[%c0_52, %c0_53, %c0_54, %c0_55], %73 {strides = array<i32>} : memref<1x8x8x128xf32, #tpu.memory_space<vmem>>, vector<1x8x8x128xf32>,
    %75 = vector.shape_cast %72 : vector<64x128xf32> to vector<8x8x128xf32>
    %cst_56 = arith.constant dense<0.000000e+00> : vector<8x128xf32>
    %76 = vector.multi_reduction <add>, %75, %cst_56 [0] : vector<8x8x128xf32> to vector<8x128xf32>
    %77 = vector.shape_cast %76 : vector<8x128xf32> to vector<1x8x128xf32>
    %c0_57 = arith.constant 0 : index
    %c0_58 = arith.constant 0 : index
    %c0_59 = arith.constant 0 : index
    %78 = vector.load %arg6[%c0_57, %c0_58, %c0_59] : memref<1x8x128xf32, #tpu.memory_space<vmem>>, vector<1x8x128xf32>
    tpu.vector_store %arg6[%c0_57, %c0_58, %c0_59], %77 {strides = array<i32>} : memref<1x8x128xf32, #tpu.memory_space<vmem>>, vector<1x8x128xf32>,
    %79 = arith.mulf %75, %75 : vector<8x8x128xf32>
    %cst_60 = arith.constant dense<0.000000e+00> : vector<8x128xf32>
    %80 = vector.multi_reduction <add>, %79, %cst_60 [0] : vector<8x8x128xf32> to vector<8x128xf32>
    %81 = vector.shape_cast %80 : vector<8x128xf32> to vector<1x8x128xf32>
    %c0_61 = arith.constant 0 : index
    %c0_62 = arith.constant 0 : index
    %c0_63 = arith.constant 0 : index
    %82 = vector.load %arg7[%c0_61, %c0_62, %c0_63] : memref<1x8x128xf32, #tpu.memory_space<vmem>>, vector<1x8x128xf32>
    tpu.vector_store %arg7[%c0_61, %c0_62, %c0_63], %81 {strides = array<i32>} : memref<1x8x128xf32, #tpu.memory_space<vmem>>, vector<1x8x128xf32>,
    return
  }
  func.func @transform_0(%arg0: i32) -> (i32, i32, i32, i32) {
    %c0_i32 = arith.constant 0 : i32
    %c0_i32_0 = arith.constant 0 : i32
    %c0_i32_1 = arith.constant 0 : i32
    %c0_i32_2 = arith.constant 0 : i32
    return %arg0, %c0_i32, %c0_i32_0, %c0_i32_1 : i32, i32, i32, i32
  }
  func.func @transform_1(%arg0: i32) -> (i32, i32) {
    %c0_i32 = arith.constant 0 : i32
    %c0_i32_0 = arith.constant 0 : i32
    %c0_i32_1 = arith.constant 0 : i32
    return %c0_i32, %c0_i32_0 : i32, i32
  }
  func.func @transform_2(%arg0: i32) -> (i32, i32) {
    %c0_i32 = arith.constant 0 : i32
    %c0_i32_0 = arith.constant 0 : i32
    %c0_i32_1 = arith.constant 0 : i32
    return %c0_i32, %c0_i32_0 : i32, i32
  }
  func.func @transform_3(%arg0: i32) -> (i32, i32, i32) {
    %c0_i32 = arith.constant 0 : i32
    %c0_i32_0 = arith.constant 0 : i32
    %c0_i32_1 = arith.constant 0 : i32
    %c0_i32_2 = arith.constant 0 : i32
    return %c0_i32, %c0_i32_0, %c0_i32_1 : i32, i32, i32
  }
  func.func @transform_4(%arg0: i32) -> (i32, i32, i32, i32) {
    %c0_i32 = arith.constant 0 : i32
    %c0_i32_0 = arith.constant 0 : i32
    %c0_i32_1 = arith.constant 0 : i32
    %c0_i32_2 = arith.constant 0 : i32
    return %arg0, %c0_i32, %c0_i32_0, %c0_i32_1 : i32, i32, i32, i32
  }
  func.func @transform_5(%arg0: i32) -> (i32, i32, i32) {
    %c0_i32 = arith.constant 0 : i32
    %c0_i32_0 = arith.constant 0 : i32
    %c0_i32_1 = arith.constant 0 : i32
    return %arg0, %c0_i32, %c0_i32_0 : i32, i32, i32
  }
  func.func @transform_6(%arg0: i32) -> (i32, i32, i32) {
    %c0_i32 = arith.constant 0 : i32
    %c0_i32_0 = arith.constant 0 : i32
    %c0_i32_1 = arith.constant 0 : i32
    return %arg0, %c0_i32, %c0_i32_0 : i32, i32, i32
  }
}

module attributes {stable_mosaic.version = 11 : i64} {
  func.func @_bn_relu_matmul_residual_kernel(%arg0: i32, %arg1: memref<128x128xf32, #tpu.memory_space<vmem>>, %arg2: memref<1x128xf32, #tpu.memory_space<vmem>>, %arg3: memref<1x128xf32, #tpu.memory_space<vmem>>, %arg4: memref<128x128xf32, #tpu.memory_space<vmem>>, %arg5: memref<128x128xf32, #tpu.memory_space<vmem>>, %arg6: memref<128x128xf32, #tpu.memory_space<vmem>>) attributes {dimension_semantics = [#tpu.dimension_semantics<parallel>], iteration_bounds = array<i64: 1>, scalar_prefetch = 0 : i64, scratch_operands = 0 : i64, tpu.core_type = #tpu.core_type<tc>, window_params = [{transform_indices = @transform_0, window_bounds = array<i64: 128, 128>}, {pipeline_mode = #tpu.pipeline_mode<synchronous>, transform_indices = @transform_1, window_bounds = array<i64: 1, 128>}, {pipeline_mode = #tpu.pipeline_mode<synchronous>, transform_indices = @transform_2, window_bounds = array<i64: 1, 128>}, {pipeline_mode = #tpu.pipeline_mode<synchronous>, transform_indices = @transform_3, window_bounds = array<i64: 128, 128>}, {transform_indices = @transform_4, window_bounds = array<i64: 128, 128>}, {transform_indices = @transform_5, window_bounds = array<i64: 128, 128>}]} {
    %c0 = arith.constant 0 : index
    %c0_0 = arith.constant 0 : index
    %0 = vector.load %arg1[%c0, %c0_0] : memref<128x128xf32, #tpu.memory_space<vmem>>, vector<128x128xf32>
    %c0_1 = arith.constant 0 : index
    %c0_2 = arith.constant 0 : index
    %1 = vector.load %arg2[%c0_1, %c0_2] : memref<1x128xf32, #tpu.memory_space<vmem>>, vector<1x128xf32>
    %2 = vector.broadcast %1 : vector<1x128xf32> to vector<128x128xf32>
    %3 = arith.mulf %0, %2 : vector<128x128xf32>
    %c0_3 = arith.constant 0 : index
    %c0_4 = arith.constant 0 : index
    %4 = vector.load %arg3[%c0_3, %c0_4] : memref<1x128xf32, #tpu.memory_space<vmem>>, vector<1x128xf32>
    %5 = vector.broadcast %4 : vector<1x128xf32> to vector<128x128xf32>
    %6 = arith.addf %3, %5 : vector<128x128xf32>
    %cst = arith.constant 0.000000e+00 : f32
    %7 = vector.broadcast %cst : f32 to vector<128x128xf32>
    %8 = arith.maximumf %6, %7 : vector<128x128xf32>
    %c0_5 = arith.constant 0 : index
    %c0_6 = arith.constant 0 : index
    %9 = vector.load %arg4[%c0_5, %c0_6] : memref<128x128xf32, #tpu.memory_space<vmem>>, vector<128x128xf32>
    %cst_7 = arith.constant dense<0.000000e+00> : vector<128x128xf32>
    %10 = tpu.matmul %8, %9, %cst_7 {dimension_numbers = #tpu.dot_dimension_numbers<[1], [0], [0], [1], [0, 0, 1, 1], [], []>} : vector<128x128xf32>, vector<128x128xf32>, vector<128x128xf32> -> vector<128x128xf32>
    %c0_8 = arith.constant 0 : index
    %c0_9 = arith.constant 0 : index
    %11 = vector.load %arg5[%c0_8, %c0_9] : memref<128x128xf32, #tpu.memory_space<vmem>>, vector<128x128xf32>
    %12 = arith.addf %10, %11 : vector<128x128xf32>
    %c0_10 = arith.constant 0 : index
    %c0_11 = arith.constant 0 : index
    %13 = vector.load %arg6[%c0_10, %c0_11] : memref<128x128xf32, #tpu.memory_space<vmem>>, vector<128x128xf32>
    tpu.vector_store %arg6[%c0_10, %c0_11], %12 {strides = array<i32>} : memref<128x128xf32, #tpu.memory_space<vmem>>, vector<128x128xf32>,
    return
  }
  func.func @transform_0(%arg0: i32) -> (i32, i32) {
    %c0_i32 = arith.constant 0 : i32
    %c0_i32_0 = arith.constant 0 : i32
    return %arg0, %c0_i32 : i32, i32
  }
  func.func @transform_1(%arg0: i32) -> (i32, i32) {
    %c0_i32 = arith.constant 0 : i32
    %c0_i32_0 = arith.constant 0 : i32
    %c0_i32_1 = arith.constant 0 : i32
    return %c0_i32, %c0_i32_0 : i32, i32
  }
  func.func @transform_2(%arg0: i32) -> (i32, i32) {
    %c0_i32 = arith.constant 0 : i32
    %c0_i32_0 = arith.constant 0 : i32
    %c0_i32_1 = arith.constant 0 : i32
    return %c0_i32, %c0_i32_0 : i32, i32
  }
  func.func @transform_3(%arg0: i32) -> (i32, i32) {
    %c0_i32 = arith.constant 0 : i32
    %c0_i32_0 = arith.constant 0 : i32
    %c0_i32_1 = arith.constant 0 : i32
    return %c0_i32, %c0_i32_0 : i32, i32
  }
  func.func @transform_4(%arg0: i32) -> (i32, i32) {
    %c0_i32 = arith.constant 0 : i32
    %c0_i32_0 = arith.constant 0 : i32
    return %arg0, %c0_i32 : i32, i32
  }
  func.func @transform_5(%arg0: i32) -> (i32, i32) {
    %c0_i32 = arith.constant 0 : i32
    %c0_i32_0 = arith.constant 0 : i32
    return %arg0, %c0_i32 : i32, i32
  }
}

</mosaic_0001>

<bundles_post_ra>
// kernel: preact_bottleneck.4
= control target key start
LH: loop header
LB: loop body
LE: loop exit
PB: predicated region body
PF: predicated region fallthrough
CT: control target
= control target key end

     0   :  { %s151_s0 = inlined_call_operand.vmem [shape: f32[128,128], index: 0, kind: input, shape index: {}]   ;;  %s152_s1 = inlined_call_operand.vmem [shape: f32[1,8,128], index: 1, kind: output, shape index: {0}]   ;;  %s153_s2 = inlined_call_operand.vmem [shape: f32[1,8,128], index: 2, kind: output, shape index: {1}]  }
   0x1   :  { %v10_v0 = vld [vmem:[%s151_s0] sm:$0xff]  ;;  %v11_v1 = vld [vmem:[%s151_s0 + $0x8] sm:$0xff]  ;;  %v12_v2 = vld [vmem:[%s151_s0 + $0x10] sm:$0xff] }
   0x2   :  { %v13_v3 = vld [vmem:[%s151_s0 + $0x18] sm:$0xff]  ;;  %v26_v4 = vadd.f32 %v11_v1, %v10_v0  ;;  %v42_v5 = vmul.f32 %v10_v0, %v10_v0  ;;  %v43_v6 = vmul.f32 %v11_v1, %v11_v1  ;;  %v44_v7 = vmul.f32 %v12_v2, %v12_v2  ;;  %v14_v8 = vld [vmem:[%s151_s0 + $0x20] sm:$0xff]  ;;  %v15_v12 = vld [vmem:[%s151_s0 + $0x28] sm:$0xff] }
   0x3   :  { %v45_v10 = vmul.f32 %v13_v3, %v13_v3  ;;  %v46_v14 = vmul.f32 %v14_v8, %v14_v8  ;;  %v16_v16 = vld [vmem:[%s151_s0 + $0x30] sm:$0xff]  ;;  %v47_v18 = vmul.f32 %v15_v12, %v15_v12  ;;  %v17_v20 = vld [vmem:[%s151_s0 + $0x38] sm:$0xff]  ;;  %v18_v24 = vld [vmem:[%s151_s0 + $0x40] sm:$0xff] }
   0x4   :  { %v27_v9 = vadd.f32 %v26_v4, %v12_v2  ;;  %v58_v11 = vadd.f32 %v43_v6, %v42_v5  ;;  %v48_v22 = vmul.f32 %v16_v16, %v16_v16  ;;  %v49_v26 = vmul.f32 %v17_v20, %v17_v20  ;;  %v19_v28 = vld [vmem:[%s151_s0 + $0x48] sm:$0xff]  ;;  %v20_v32 = vld [vmem:[%s151_s0 + $0x50] sm:$0xff]  ;;  %v21_v36 = vld [vmem:[%s151_s0 + $0x58] sm:$0xff] }
   0x5   :  { %v50_v30 = vmul.f32 %v18_v24, %v18_v24  ;;  %v51_v34 = vmul.f32 %v19_v28, %v19_v28  ;;  %v52_v38 = vmul.f32 %v20_v32, %v20_v32  ;;  %v22_v40 = vld [vmem:[%s151_s0 + $0x60] sm:$0xff]  ;;  %v53_v42 = vmul.f32 %v21_v36, %v21_v36  ;;  %v23_v44 = vld [vmem:[%s151_s0 + $0x68] sm:$0xff]  ;;  %v24_v48 = vld [vmem:[%s151_s0 + $0x70] sm:$0xff] }
   0x6   :  { %v28_v13 = vadd.f32 %v27_v9, %v13_v3  ;;  %v59_v15 = vadd.f32 %v58_v11, %v44_v7  ;;  %v54_v46 = vmul.f32 %v22_v40, %v22_v40  ;;  %v55_v50 = vmul.f32 %v23_v44, %v23_v44  ;;  %v25_v52 = vld [vmem:[%s151_s0 + $0x78] sm:$0xff] }
   0x7   :  { %v56_v54 = vmul.f32 %v24_v48, %v24_v48  ;;  %v57_v57 = vmul.f32 %v25_v52, %v25_v52 }
   0x8   :  { %v29_v17 = vadd.f32 %v28_v13, %v14_v8  ;;  %v60_v19 = vadd.f32 %v59_v15, %v45_v10 }
   0xa   :  { %v30_v21 = vadd.f32 %v29_v17, %v15_v12  ;;  %v61_v23 = vadd.f32 %v60_v19, %v46_v14 }
   0xc   :  { %v31_v25 = vadd.f32 %v30_v21, %v16_v16  ;;  %v62_v27 = vadd.f32 %v61_v23, %v47_v18 }
   0xe   :  { %v32_v29 = vadd.f32 %v31_v25, %v17_v20  ;;  %v63_v31 = vadd.f32 %v62_v27, %v48_v22 }
  0x10   :  { %v33_v33 = vadd.f32 %v32_v29, %v18_v24  ;;  %v64_v35 = vadd.f32 %v63_v31, %v49_v26 }
  0x12   :  { %v34_v37 = vadd.f32 %v33_v33, %v19_v28  ;;  %v65_v39 = vadd.f32 %v64_v35, %v50_v30 }
  0x14   :  { %v35_v41 = vadd.f32 %v34_v37, %v20_v32  ;;  %v66_v43 = vadd.f32 %v65_v39, %v51_v34 }
  0x16   :  { %v36_v45 = vadd.f32 %v35_v41, %v21_v36  ;;  %v67_v47 = vadd.f32 %v66_v43, %v52_v38 }
  0x18   :  { %v37_v49 = vadd.f32 %v36_v45, %v22_v40  ;;  %v68_v51 = vadd.f32 %v67_v47, %v53_v42 }
  0x1a   :  { %v38_v53 = vadd.f32 %v37_v49, %v23_v44  ;;  %v69_v55 = vadd.f32 %v68_v51, %v54_v46 }
  0x1c   :  { %v39_v56 = vadd.f32 %v38_v53, %v24_v48  ;;  %v70_v58 = vadd.f32 %v69_v55, %v55_v50 }
  0x1e   :  { %v40_v59 = vadd.f32 %v39_v56, %v25_v52  ;;  %v71_v60 = vadd.f32 %v70_v58, %v56_v54 }
  0x20   :  { %41 = vst [vmem:[%s152_s1] sm:$0xff] %v40_v59  ;;  %v72_v61 = vadd.f32 %v71_v60, %v57_v57 }
  0x22   :  { %73 = vst [vmem:[%s153_s2] sm:$0xff] %v72_v61 }

// kernel: preact_bottleneck.7
= control target key start
LH: loop header
LB: loop body
LE: loop exit
PB: predicated region body
PF: predicated region fallthrough
CT: control target
= control target key end

     0   :  { %s677_s0 = inlined_call_operand.vmem [shape: f32[128,128], index: 0, kind: input, shape index: {}]   ;;  %s678_s1 = inlined_call_operand.vmem [shape: f32[1,128], index: 1, kind: input, shape index: {}]   ;;  %s679_s2 = inlined_call_operand.vmem [shape: f32[1,128], index: 2, kind: input, shape index: {}]   ;;  %s680_s3 = inlined_call_operand.vmem [shape: f32[128,128], index: 3, kind: input, shape index: {}]   ;;  %s681_s4 = inlined_call_operand.vmem [shape: f32[128,128], index: 4, kind: input, shape index: {}]   ;;  %s682_s5 = inlined_call_operand.hbm [shape: f32[128,128], index: 5, kind: output, shape index: {}]  }
   0x1   :  { %v114_v0 = vld [vmem:[%s680_s3 + $0x78] sm:$0xff]  ;;  %v113_v1 = vld [vmem:[%s680_s3 + $0x70] sm:$0xff]  ;;  %v112_v2 = vld [vmem:[%s680_s3 + $0x68] sm:$0xff] }
   0x2   :  { %342 = vmatprep.subr.mxu0 %v114_v0  ;;  %398 = vmatprep.subr.mxu1 %v114_v0  ;;  %v111_v3 = vld [vmem:[%s680_s3 + $0x60] sm:$0xff]  ;;  %v110_v4 = vld [vmem:[%s680_s3 + $0x58] sm:$0xff]  ;;  %v109_v5 = vld [vmem:[%s680_s3 + $0x50] sm:$0xff] }
   0x3   :  { %343 = vmatpush3.msra.mxu0 %v114_v0  ;;  %414 = vmatpush3.msra.mxu1 %v114_v0  ;;  %v108_v6 = vld [vmem:[%s680_s3 + $0x48] sm:$0xff] }
   0x4   :  { %344 = vmatprep.subr.mxu0 %v113_v1  ;;  %399 = vmatprep.subr.mxu1 %v113_v1 }
   0x5   :  { %345 = vmatpush3.msra.mxu0 %v113_v1  ;;  %415 = vmatpush3.msra.mxu1 %v113_v1 }
   0x6   :  { %346 = vmatprep.subr.mxu0 %v112_v2  ;;  %400 = vmatprep.subr.mxu1 %v112_v2 }
   0x7   :  { %347 = vmatpush3.msra.mxu0 %v112_v2  ;;  %416 = vmatpush3.msra.mxu1 %v112_v2 }
   0x8   :  { %348 = vmatprep.subr.mxu0 %v111_v3  ;;  %401 = vmatprep.subr.mxu1 %v111_v3 }
   0x9   :  { %349 = vmatpush3.msra.mxu0 %v111_v3  ;;  %417 = vmatpush3.msra.mxu1 %v111_v3 }
   0xa   :  { %350 = vmatprep.subr.mxu0 %v110_v4  ;;  %402 = vmatprep.subr.mxu1 %v110_v4 }
   0xb   :  { %351 = vmatpush3.msra.mxu0 %v110_v4  ;;  %418 = vmatpush3.msra.mxu1 %v110_v4 }
   0xc   :  { %352 = vmatprep.subr.mxu0 %v109_v5  ;;  %403 = vmatprep.subr.mxu1 %v109_v5 }
   0xd   :  { %10 = vsyncpa [#allocation3], 0  ;;  %353 = vmatpush3.msra.mxu0 %v109_v5  ;;  %419 = vmatpush3.msra.mxu1 %v109_v5  ;;  %v107_v7 = vld [vmem:[%s680_s3 + $0x40] sm:$0xff]  ;;  %v106_v8 = vld [vmem:[%s680_s3 + $0x38] sm:$0xff]  ;;  %s455_s6 = smov [#allocation2]  }
   0xe   :  { %354 = vmatprep.subr.mxu0 %v108_v6  ;;  %404 = vmatprep.subr.mxu1 %v108_v6  ;;  %v105_v9 = vld [vmem:[%s680_s3 + $0x30] sm:$0xff]  ;;  %v21_v10 = vld [vmem:[%s677_s0] sm:$0xff]  ;;  %v104_v13 = vld [vmem:[%s680_s3 + $0x28] sm:$0xff] }
   0xf   :  { %355 = vmatpush3.msra.mxu0 %v108_v6  ;;  %420 = vmatpush3.msra.mxu1 %v108_v6  ;;  %v524_v11 = vld [vmem:[%s678_s1] ss:$0 sm:$0xff]  ;;  %v22_v14 = vld [vmem:[%s677_s0 + $0x8] sm:$0xff]  ;;  %v23_v16 = vld [vmem:[%s677_s0 + $0x10] sm:$0xff] }
  0x10   :  { %356 = vmatprep.subr.mxu0 %v107_v7  ;;  %405 = vmatprep.subr.mxu1 %v107_v7  ;;  %v29_v12 = vld [vmem:[%s677_s0 + $0x40] sm:$0xff]  ;;  %v30_v15 = vld [vmem:[%s677_s0 + $0x48] sm:$0xff]  ;;  %v44_v18 = vmul.f32 %v524_v11, %v21_v10  ;;  %v31_v20 = vld [vmem:[%s677_s0 + $0x50] sm:$0xff]  ;;  %v45_v22 = vmul.f32 %v524_v11, %v22_v14  ;;  %v46_v25 = vmul.f32 %v524_v11, %v23_v16 }
  0x11   :  { %357 = vmatpush3.msra.mxu0 %v107_v7  ;;  %421 = vmatpush3.msra.mxu1 %v107_v7  ;;  %v103_v17 = vld [vmem:[%s680_s3 + $0x20] sm:$0xff]  ;;  %v52_v19 = vmul.f32 %v524_v11, %v29_v12  ;;  %v53_v23 = vmul.f32 %v524_v11, %v30_v15  ;;  %v102_v24 = vld [vmem:[%s680_s3 + $0x18] sm:$0xff]  ;;  %v54_v27 = vmul.f32 %v524_v11, %v31_v20  ;;  %v101_v30 = vld [vmem:[%s680_s3 + $0x10] sm:$0xff] }
  0x12   :  { %358 = vmatprep.subr.mxu0 %v106_v8  ;;  %406 = vmatprep.subr.mxu1 %v106_v8  ;;  %v552_v21 = vld [vmem:[%s679_s2] ss:$0 sm:$0xff]  ;;  %v24_v26 = vld [vmem:[%s677_s0 + $0x18] sm:$0xff]  ;;  %v100_v37 = vld [vmem:[%s680_s3 + $0x8] sm:$0xff] }
  0x13   :  { %359 = vmatpush3.msra.mxu0 %v106_v8  ;;  %422 = vmatpush3.msra.mxu1 %v106_v8  ;;  %v32_v28 = vld [vmem:[%s677_s0 + $0x58] sm:$0xff]  ;;  %v25_v29 = vld [vmem:[%s677_s0 + $0x20] sm:$0xff]  ;;  %v67_v31 = vadd.f32 %v552_v21, %v44_v18  ;;  %v75_v32 = vadd.f32 %v552_v21, %v52_v19  ;;  %v68_v34 = vadd.f32 %v552_v21, %v45_v22  ;;  %v26_v41 = vld [vmem:[%s677_s0 + $0x28] sm:$0xff] }
  0x14   :  { %360 = vmatprep.subr.mxu0 %v105_v9  ;;  %407 = vmatprep.subr.mxu1 %v105_v9  ;;  %v33_v33 = vld [vmem:[%s677_s0 + $0x60] sm:$0xff]  ;;  %v76_v35 = vadd.f32 %v552_v21, %v53_v23  ;;  %v47_v36 = vmul.f32 %v524_v11, %v24_v26  ;;  %v69_v38 = vadd.f32 %v552_v21, %v46_v25  ;;  %v34_v44 = vld [vmem:[%s677_s0 + $0x68] sm:$0xff]  ;;  %v27_v48 = vld [vmem:[%s677_s0 + $0x30] sm:$0xff] }
  0x15   :  { %361 = vmatpush3.msra.mxu0 %v105_v9  ;;  %423 = vmatpush3.msra.mxu1 %v105_v9  ;;  %v55_v39 = vmul.f32 %v524_v11, %v32_v28  ;;  %v48_v40 = vmul.f32 %v524_v11, %v25_v29  ;;  %v77_v42 = vadd.f32 %v552_v21, %v54_v27  ;;  %v99_v45 = vld [vmem:[%s680_s3] sm:$0xff]  ;;  %v83_v46 = vmax.f32 %v67_v31, 0.0  ;;  %v35_v49 = vld [vmem:[%s677_s0 + $0x70] sm:$0xff]  ;;  %v28_v62 = vld [vmem:[%s677_s0 + $0x38] sm:$0xff] }
  0x16   :  { %362 = vmatprep.subr.mxu0 %v104_v13  ;;  %408 = vmatprep.subr.mxu1 %v104_v13  ;;  %v56_v43 = vmul.f32 %v524_v11, %v33_v33  ;;  %v91_v47 = vmax.f32 %v75_v32, 0.0  ;;  %v84_v50 = vmax.f32 %v68_v34, 0.0  ;;  %v92_v51 = vmax.f32 %v76_v35, 0.0  ;;  %v36_v63 = vld [vmem:[%s677_s0 + $0x78] sm:$0xff]  ;;  %v116_v18 = vld [vmem:[%s681_s4 + $0x8] sm:$0xff]  ;;  %v115_v22 = vld [vmem:[%s681_s4] sm:$0xff] }
  0x17   :  { %363 = vmatpush3.msra.mxu0 %v104_v13  ;;  %424 = vmatpush3.msra.mxu1 %v104_v13  ;;  %v70_v52 = vadd.f32 %v552_v21, %v47_v36  ;;  %v49_v53 = vmul.f32 %v524_v11, %v26_v41  ;;  %v85_v54 = vmax.f32 %v69_v38, 0.0  ;;  %v78_v55 = vadd.f32 %v552_v21, %v55_v39  ;;  %v124_v19 = vld [vmem:[%s681_s4 + $0x48] sm:$0xff]  ;;  %v123_v23 = vld [vmem:[%s681_s4 + $0x40] sm:$0xff]  ;;  %v118_v28 = vld [vmem:[%s681_s4 + $0x18] sm:$0xff]  ;;  %s297_s0 = sshll.u32 %s455_s6, 4  ;;  %s298_s0 = int_to_ptr.vmem [resolvable:$true] %s297_s0 }
  0x18   :  { %364 = vmatprep.subr.mxu0 %v103_v17  ;;  %409 = vmatprep.subr.mxu1 %v103_v17  ;;  %v71_v56 = vadd.f32 %v552_v21, %v48_v40  ;;  %v57_v57 = vmul.f32 %v524_v11, %v34_v44  ;;  %v93_v58 = vmax.f32 %v77_v42, 0.0  ;;  %v79_v59 = vadd.f32 %v552_v21, %v56_v43  ;;  %v126_v29 = vld [vmem:[%s681_s4 + $0x58] sm:$0xff]  ;;  %v117_v34 = vld [vmem:[%s681_s4 + $0x10] sm:$0xff]  ;;  %v120_v40 = vld [vmem:[%s681_s4 + $0x28] sm:$0xff]  ;;  %s433_s2 = scalar_lea.vmem %s298_s0, 2048  ;;  %p438_p1 = scmp.lt.s32.totalorder %s298_s0, %s298_s0 }
  0x19   :  { %365 = vmatpush3.msra.mxu0 %v103_v17  ;;  %425 = vmatpush3.msra.mxu1 %v103_v17  ;;  %v50_v60 = vmul.f32 %v524_v11, %v27_v48  ;;  %v58_v61 = vmul.f32 %v524_v11, %v35_v49  ;;  %v86_v0 = vmax.f32 %v70_v52, 0.0  ;;  %v72_v1 = vadd.f32 %v552_v21, %v49_v53  ;;  %v125_v35 = vld [vmem:[%s681_s4 + $0x50] sm:$0xff]  ;;  %v128_v41 = vld [vmem:[%s681_s4 + $0x68] sm:$0xff]  ;;  %v122_v52 = vld [vmem:[%s681_s4 + $0x38] sm:$0xff]  ;;  %p434_p0 = scmp.ne.s32.totalorder %s298_s0, %s433_s2  ;;  %p439_p2 = scmp.lt.s32.totalorder %s433_s2, %s433_s2 }
  0x1a   :  { %366 = vmatprep.subr.mxu0 %v102_v24  ;;  %410 = vmatprep.subr.mxu1 %v102_v24  ;;  %v94_v2 = vmax.f32 %v78_v55, 0.0  ;;  %v80_v3 = vadd.f32 %v552_v21, %v57_v57  ;;  %v51_v4 = vmul.f32 %v524_v11, %v28_v62  ;;  %v59_v5 = vmul.f32 %v524_v11, %v36_v63  ;;  %v130_v53 = vld [vmem:[%s681_s4 + $0x78] sm:$0xff] }
  0x1b   :  { %367 = vmatpush3.msra.mxu0 %v102_v24  ;;  %426 = vmatpush3.msra.mxu1 %v102_v24  ;;  %v87_v6 = vmax.f32 %v71_v56, 0.0  ;;  %v95_v7 = vmax.f32 %v79_v59, 0.0  ;;  %v73_v8 = vadd.f32 %v552_v21, %v50_v60  ;;  %v81_v9 = vadd.f32 %v552_v21, %v58_v61  ;;  %v129_v59 = vld [vmem:[%s681_s4 + $0x70] sm:$0xff]  ;;  %p440_p3 = por %p439_p2, %p438_p1 }
  0x1c   :  { %368 = vmatprep.subr.mxu0 %v101_v30  ;;  %411 = vmatprep.subr.mxu1 %v101_v30  ;;  %v88_v10 = vmax.f32 %v72_v1, 0.0  ;;  %v96_v12 = vmax.f32 %v80_v3, 0.0  ;;  %v74_v13 = vadd.f32 %v552_v21, %v51_v4  ;;  %v82_v14 = vadd.f32 %v552_v21, %v59_v5 }
  0x1d   :  { %369 = vmatpush3.msra.mxu0 %v101_v30  ;;  %427 = vmatpush3.msra.mxu1 %v101_v30  ;;  %v89_v15 = vmax.f32 %v73_v8, 0.0  ;;  %v97_v11 = vmax.f32 %v81_v9, 0.0  ;;  %p441_p4 = pnand %p440_p3, %p434_p0 }
  0x1e   :  { %370 = vmatprep.subr.mxu0 %v100_v37  ;;  %412 = vmatprep.subr.mxu1 %v100_v37  ;;  %v90_v16 = vmax.f32 %v74_v13, 0.0  ;;  %v98_v17 = vmax.f32 %v82_v14, 0.0 }
  0x1f   :  { %371 = vmatpush3.msra.mxu0 %v100_v37  ;;  %428 = vmatpush3.msra.mxu1 %v100_v37 }
  0x20   :  { %372 = vmatprep.subr.mxu0 %v99_v45  ;;  %413 = vmatprep.subr.mxu1 %v99_v45 }
  0x21   :  { %373 = vmatpush3.msra.mxu0 %v99_v45  ;;  %429 = vmatpush3.msra.mxu1 %v99_v45 }
  0x22   :  { %374 = vmatprep.mubr.f32.mxu0 %v83_v46  ;;  %386 = vmatprep.mubr.f32.mxu1 %v91_v47  ;;  %v119_v46 = vld [vmem:[%s681_s4 + $0x20] sm:$0xff] }
  0x23   :  { %375 = vmatmul.mubr.f32.vlgmr.msra.gmra.mxu0 %v84_v50  ;;  %387 = vmatmul.mubr.f32.vlgmr.msra.gmra.mxu1 %v92_v51  ;;  %v127_v47 = vld [vmem:[%s681_s4 + $0x60] sm:$0xff] }
  0x24   :  { %377 = vmatprep.mubr.f32.mxu0 %v85_v54  ;;  %389 = vmatprep.mubr.f32.mxu1 %v93_v58  ;;  %v121_v58 = vld [vmem:[%s681_s4 + $0x30] sm:$0xff] }
  0x27   :  { %378 = vmatmul.mubr.f32.gmra.mxu0 %v86_v0  ;;  %390 = vmatmul.mubr.f32.gmra.mxu1 %v94_v2 }
  0x28   :  { %380 = vmatprep.mubr.f32.mxu0 %v87_v6  ;;  %392 = vmatprep.mubr.f32.mxu1 %v95_v7 }
  0x2b   :  { %381 = vmatmul.mubr.f32.gmra.mxu0 %v88_v10  ;;  %393 = vmatmul.mubr.f32.gmra.mxu1 %v96_v12 }
  0x2c   :  { %383 = vmatprep.mubr.f32.mxu0 %v89_v15  ;;  %395 = vmatprep.mubr.f32.mxu1 %v97_v11 }
  0x2f   :  { %384 = vmatmul.mubr.f32.gmra.mxu0 %v90_v16  ;;  %396 = vmatmul.mubr.f32.gmra.mxu1 %v98_v17 }
  0xe3   :  { %v376_v20 = vpop.f32.mrf.mxu0  ;;  %v388_v21 = vpop.f32.mrf.mxu1 }
  0xe4   :  { %v203_v24 = vadd.f32 %v376_v20, %v116_v18  ;;  %v243_v25 = vadd.f32 %v388_v21, %v124_v19 }
  0xe5   :  { %v197_v26 = vpop.f32.mrf.mxu0  ;;  %v237_v27 = vpop.f32.mrf.mxu1 }
  0xe6   :  { %277 = vst [vmem:[#allocation2 + $0x8] sm:$0xff] %v203_v24  ;;  %285 = vst [vmem:[#allocation2 + $0x48] sm:$0xff] %v243_v25  ;;  %v198_v30 = vadd.f32 %v197_v26, %v115_v22  ;;  %v238_v31 = vadd.f32 %v237_v27, %v123_v23 }
  0xe7   :  { %v379_v32 = vpop.f32.mrf.mxu0  ;;  %v391_v33 = vpop.f32.mrf.mxu1 }
  0xe8   :  { %276 = vst [vmem:[#allocation2] sm:$0xff] %v198_v30  ;;  %284 = vst [vmem:[#allocation2 + $0x40] sm:$0xff] %v238_v31  ;;  %v213_v36 = vadd.f32 %v379_v32, %v118_v28  ;;  %v253_v37 = vadd.f32 %v391_v33, %v126_v29 }
  0xe9   :  { %v207_v38 = vpop.f32.mrf.mxu0  ;;  %v247_v39 = vpop.f32.mrf.mxu1 }
  0xea   :  { %279 = vst [vmem:[#allocation2 + $0x18] sm:$0xff] %v213_v36  ;;  %287 = vst [vmem:[#allocation2 + $0x58] sm:$0xff] %v253_v37  ;;  %v208_v42 = vadd.f32 %v207_v38, %v117_v34  ;;  %v248_v43 = vadd.f32 %v247_v39, %v125_v35 }
  0xeb   :  { %v382_v44 = vpop.f32.mrf.mxu0  ;;  %v394_v45 = vpop.f32.mrf.mxu1 }
  0xec   :  { %278 = vst [vmem:[#allocation2 + $0x10] sm:$0xff] %v208_v42  ;;  %286 = vst [vmem:[#allocation2 + $0x50] sm:$0xff] %v248_v43  ;;  %v223_v48 = vadd.f32 %v382_v44, %v120_v40  ;;  %v263_v49 = vadd.f32 %v394_v45, %v128_v41 }
  0xed   :  { %v217_v50 = vpop.f32.mrf.mxu0  ;;  %v257_v51 = vpop.f32.mrf.mxu1 }
  0xee   :  { %281 = vst [vmem:[#allocation2 + $0x28] sm:$0xff] %v223_v48  ;;  %289 = vst [vmem:[#allocation2 + $0x68] sm:$0xff] %v263_v49  ;;  %v218_v54 = vadd.f32 %v217_v50, %v119_v46  ;;  %v258_v55 = vadd.f32 %v257_v51, %v127_v47 }
  0xef   :  { %v385_v56 = vpop.f32.mrf.mxu0  ;;  %v397_v57 = vpop.f32.mrf.mxu1 }
  0xf0   :  { %280 = vst [vmem:[#allocation2 + $0x20] sm:$0xff] %v218_v54  ;;  %288 = vst [vmem:[#allocation2 + $0x60] sm:$0xff] %v258_v55  ;;  %v233_v60 = vadd.f32 %v385_v56, %v122_v52  ;;  %v273_v61 = vadd.f32 %v397_v57, %v130_v53 }
  0xf1   :  { %v227_v62 = vpop.f32.mrf.mxu0  ;;  %v267_v63 = vpop.f32.mrf.mxu1 }
  0xf2   :  { %283 = vst [vmem:[#allocation2 + $0x38] sm:$0xff] %v233_v60  ;;  %291 = vst [vmem:[#allocation2 + $0x78] sm:$0xff] %v273_v61  ;;  %v228_v0 = vadd.f32 %v227_v62, %v121_v58  ;;  %v268_v1 = vadd.f32 %v267_v63, %v129_v59 }
  0xf4   :  { %282 = vst [vmem:[#allocation2 + $0x30] sm:$0xff] %v228_v0  ;;  %290 = vst [vmem:[#allocation2 + $0x70] sm:$0xff] %v268_v1 }
  0xf5   :  { %444 = shalt.err (!%p441_p4)
}
  0xf6   :  { %s456_s4 = smov 128   ;;  %s457_s11 = smov 8  }
  0xf7   :  { %303 = dma.vmem_to_hbm [thread:$0]  %s298_s0, 2048, %s682_s5, [#allocation3], %s456_s4, %s456_s4, %s457_s11  }
  0xf8   :  { %453 = dma.done.wait [#allocation3], 2048  }
  0xf9   :  { %454 = vsyncadd [#allocation3], 4294965248 }
  0xfa   :  { %307 = vsyncpa [#allocation3], 1 }

// kernel: preact_bottleneck.5
= control target key start
LH: loop header
LB: loop body
LE: loop exit
PB: predicated region body
PF: predicated region fallthrough
CT: control target
= control target key end

     0   :  { %s684_s3 = inlined_call_operand.vmem [shape: f32[128,128], index: 3, kind: input, shape index: {}]   ;;  %s685_s0 = inlined_call_operand.vmem [shape: f32[128,128], index: 0, kind: input, shape index: {}]   ;;  %s686_s1 = inlined_call_operand.vmem [shape: f32[1,128], index: 1, kind: input, shape index: {}]   ;;  %s687_s2 = inlined_call_operand.vmem [shape: f32[1,128], index: 2, kind: input, shape index: {}]   ;;  %s688_s4 = inlined_call_operand.vmem [shape: f32[128,128], index: 4, kind: output, shape index: {0}]   ;;  %s689_s5 = inlined_call_operand.vmem [shape: f32[1,8,128], index: 5, kind: output, shape index: {1}]   ;;  %s690_s6 = inlined_call_operand.vmem [shape: f32[1,8,128], index: 6, kind: output, shape index: {2}]  }
   0x1   :  { %v113_v0 = vld [vmem:[%s684_s3 + $0x78] sm:$0xff]  ;;  %v112_v1 = vld [vmem:[%s684_s3 + $0x70] sm:$0xff]  ;;  %v111_v2 = vld [vmem:[%s684_s3 + $0x68] sm:$0xff] }
   0x2   :  { %369 = vmatprep.subr.mxu0 %v113_v0  ;;  %425 = vmatprep.subr.mxu1 %v113_v0  ;;  %v110_v3 = vld [vmem:[%s684_s3 + $0x60] sm:$0xff]  ;;  %v109_v6 = vld [vmem:[%s684_s3 + $0x58] sm:$0xff]  ;;  %v108_v8 = vld [vmem:[%s684_s3 + $0x50] sm:$0xff] }
   0x3   :  { %370 = vmatpush3.msra.mxu0 %v113_v0  ;;  %441 = vmatpush3.msra.mxu1 %v113_v0  ;;  %v20_v4 = vld [vmem:[%s685_s0] sm:$0xff]  ;;  %v107_v10 = vld [vmem:[%s684_s3 + $0x48] sm:$0xff]  ;;  %v105_v13 = vld [vmem:[%s684_s3 + $0x38] sm:$0xff] }
   0x4   :  { %371 = vmatprep.subr.mxu0 %v112_v1  ;;  %426 = vmatprep.subr.mxu1 %v112_v1  ;;  %v510_v5 = vld [vmem:[%s686_s1] ss:$0 sm:$0xff]  ;;  %v104_v15 = vld [vmem:[%s684_s3 + $0x30] sm:$0xff]  ;;  %v103_v16 = vld [vmem:[%s684_s3 + $0x28] sm:$0xff] }
   0x5   :  { %372 = vmatpush3.msra.mxu0 %v112_v1  ;;  %442 = vmatpush3.msra.mxu1 %v112_v1  ;;  %v43_v7 = vmul.f32 %v510_v5, %v20_v4  ;;  %v522_v9 = vld [vmem:[%s687_s2] ss:$0 sm:$0xff]  ;;  %v21_v17 = vld [vmem:[%s685_s0 + $0x8] sm:$0xff]  ;;  %v22_v18 = vld [vmem:[%s685_s0 + $0x10] sm:$0xff] }
   0x6   :  { %373 = vmatprep.subr.mxu0 %v111_v2  ;;  %427 = vmatprep.subr.mxu1 %v111_v2  ;;  %v106_v12 = vld [vmem:[%s684_s3 + $0x40] sm:$0xff]  ;;  %v29_v21 = vld [vmem:[%s685_s0 + $0x48] sm:$0xff]  ;;  %v44_v22 = vmul.f32 %v510_v5, %v21_v17  ;;  %v30_v23 = vld [vmem:[%s685_s0 + $0x50] sm:$0xff]  ;;  %v45_v25 = vmul.f32 %v510_v5, %v22_v18 }
   0x7   :  { %374 = vmatpush3.msra.mxu0 %v111_v2  ;;  %443 = vmatpush3.msra.mxu1 %v111_v2  ;;  %v66_v11 = vadd.f32 %v522_v9, %v43_v7  ;;  %v28_v19 = vld [vmem:[%s685_s0 + $0x40] sm:$0xff]  ;;  %v101_v24 = vld [vmem:[%s684_s3 + $0x18] sm:$0xff]  ;;  %v52_v29 = vmul.f32 %v510_v5, %v29_v21  ;;  %v100_v30 = vld [vmem:[%s684_s3 + $0x10] sm:$0xff]  ;;  %v53_v31 = vmul.f32 %v510_v5, %v30_v23 }
   0x8   :  { %375 = vmatprep.subr.mxu0 %v110_v3  ;;  %428 = vmatprep.subr.mxu1 %v110_v3  ;;  %v102_v20 = vld [vmem:[%s684_s3 + $0x20] sm:$0xff]  ;;  %v23_v26 = vld [vmem:[%s685_s0 + $0x18] sm:$0xff]  ;;  %v51_v27 = vmul.f32 %v510_v5, %v28_v19  ;;  %v67_v33 = vadd.f32 %v522_v9, %v44_v22  ;;  %v99_v36 = vld [vmem:[%s684_s3 + $0x8] sm:$0xff]  ;;  %v68_v37 = vadd.f32 %v522_v9, %v45_v25 }
   0x9   :  { %376 = vmatpush3.msra.mxu0 %v110_v3  ;;  %444 = vmatpush3.msra.mxu1 %v110_v3  ;;  %v82_v14 = vmax.f32 %v66_v11, 0.0  ;;  %v24_v28 = vld [vmem:[%s685_s0 + $0x20] sm:$0xff]  ;;  %v31_v32 = vld [vmem:[%s685_s0 + $0x58] sm:$0xff]  ;;  %v46_v34 = vmul.f32 %v510_v5, %v23_v26  ;;  %v25_v39 = vld [vmem:[%s685_s0 + $0x28] sm:$0xff]  ;;  %v75_v42 = vadd.f32 %v522_v9, %v52_v29  ;;  %v76_v45 = vadd.f32 %v522_v9, %v53_v31 }
   0xa   :  { %377 = vmatprep.subr.mxu0 %v109_v6  ;;  %429 = vmatprep.subr.mxu1 %v109_v6  ;;  %v32_v35 = vld [vmem:[%s685_s0 + $0x60] sm:$0xff]  ;;  %v47_v38 = vmul.f32 %v510_v5, %v24_v28  ;;  %v74_v40 = vadd.f32 %v522_v9, %v51_v27  ;;  %v26_v41 = vld [vmem:[%s685_s0 + $0x30] sm:$0xff]  ;;  %v54_v43 = vmul.f32 %v510_v5, %v31_v32  ;;  %v33_v47 = vld [vmem:[%s685_s0 + $0x68] sm:$0xff]  ;;  %v83_v48 = vmax.f32 %v67_v33, 0.0 }
   0xb   :  { %378 = vmatpush3.msra.mxu0 %v109_v6  ;;  %445 = vmatpush3.msra.mxu1 %v109_v6  ;;  %v98_v44 = vld [vmem:[%s684_s3] sm:$0xff]  ;;  %v55_v46 = vmul.f32 %v510_v5, %v32_v35  ;;  %v69_v49 = vadd.f32 %v522_v9, %v46_v34  ;;  %v48_v50 = vmul.f32 %v510_v5, %v25_v39  ;;  %v34_v51 = vld [vmem:[%s685_s0 + $0x70] sm:$0xff]  ;;  %v84_v52 = vmax.f32 %v68_v37, 0.0  ;;  %v27_v55 = vld [vmem:[%s685_s0 + $0x38] sm:$0xff] }
   0xc   :  { %379 = vmatprep.subr.mxu0 %v108_v8  ;;  %430 = vmatprep.subr.mxu1 %v108_v8  ;;  %v70_v53 = vadd.f32 %v522_v9, %v47_v38  ;;  %v49_v54 = vmul.f32 %v510_v5, %v26_v41  ;;  %v90_v56 = vmax.f32 %v74_v40, 0.0  ;;  %v91_v57 = vmax.f32 %v75_v42, 0.0  ;;  %v35_v63 = vld [vmem:[%s685_s0 + $0x78] sm:$0xff] }
   0xd   :  { %380 = vmatpush3.msra.mxu0 %v108_v8  ;;  %446 = vmatpush3.msra.mxu1 %v108_v8  ;;  %v77_v58 = vadd.f32 %v522_v9, %v54_v43  ;;  %v56_v59 = vmul.f32 %v510_v5, %v33_v47  ;;  %v92_v60 = vmax.f32 %v76_v45, 0.0  ;;  %v78_v61 = vadd.f32 %v522_v9, %v55_v46 }
   0xe   :  { %381 = vmatprep.subr.mxu0 %v107_v10  ;;  %431 = vmatprep.subr.mxu1 %v107_v10  ;;  %v57_v62 = vmul.f32 %v510_v5, %v34_v51  ;;  %v85_v0 = vmax.f32 %v69_v49, 0.0  ;;  %v71_v1 = vadd.f32 %v522_v9, %v48_v50  ;;  %v50_v2 = vmul.f32 %v510_v5, %v27_v55 }
   0xf   :  { %382 = vmatpush3.msra.mxu0 %v107_v10  ;;  %447 = vmatpush3.msra.mxu1 %v107_v10  ;;  %v86_v3 = vmax.f32 %v70_v53, 0.0  ;;  %v72_v4 = vadd.f32 %v522_v9, %v49_v54  ;;  %v93_v6 = vmax.f32 %v77_v58, 0.0  ;;  %v79_v7 = vadd.f32 %v522_v9, %v56_v59 }
  0x10   :  { %383 = vmatprep.subr.mxu0 %v106_v12  ;;  %432 = vmatprep.subr.mxu1 %v106_v12  ;;  %v58_v8 = vmul.f32 %v510_v5, %v35_v63  ;;  %v94_v10 = vmax.f32 %v78_v61, 0.0  ;;  %v80_v11 = vadd.f32 %v522_v9, %v57_v62 }
  0x11   :  { %384 = vmatpush3.msra.mxu0 %v106_v12  ;;  %448 = vmatpush3.msra.mxu1 %v106_v12  ;;  %v87_v12 = vmax.f32 %v71_v1, 0.0 }
  0x12   :  { %385 = vmatprep.subr.mxu0 %v105_v13  ;;  %433 = vmatprep.subr.mxu1 %v105_v13  ;;  %v96_v17 = vmax.f32 %v80_v11, 0.0 }
  0x13   :  { %386 = vmatpush3.msra.mxu0 %v105_v13  ;;  %449 = vmatpush3.msra.mxu1 %v105_v13  ;;  %v73_v13 = vadd.f32 %v522_v9, %v50_v2 }
  0x14   :  { %387 = vmatprep.subr.mxu0 %v104_v15  ;;  %401 = vmatprep.mubr.f32.mxu0 %v82_v14  ;;  %v88_v14 = vmax.f32 %v72_v4, 0.0 }
  0x15   :  { %388 = vmatpush3.msra.mxu0 %v104_v15  ;;  %434 = vmatprep.subr.mxu1 %v104_v15  ;;  %v89_v18 = vmax.f32 %v73_v13, 0.0 }
  0x16   :  { %389 = vmatprep.subr.mxu0 %v103_v16  ;;  %450 = vmatpush3.msra.mxu1 %v104_v15  ;;  %v95_v15 = vmax.f32 %v79_v7, 0.0 }
  0x17   :  { %390 = vmatpush3.msra.mxu0 %v103_v16  ;;  %435 = vmatprep.subr.mxu1 %v103_v16 }
  0x18   :  { %391 = vmatprep.subr.mxu0 %v102_v20  ;;  %451 = vmatpush3.msra.mxu1 %v103_v16  ;;  %v81_v16 = vadd.f32 %v522_v9, %v58_v8 }
  0x19   :  { %392 = vmatpush3.msra.mxu0 %v102_v20  ;;  %436 = vmatprep.subr.mxu1 %v102_v20 }
  0x1a   :  { %393 = vmatprep.subr.mxu0 %v101_v24  ;;  %452 = vmatpush3.msra.mxu1 %v102_v20  ;;  %v97_v5 = vmax.f32 %v81_v16, 0.0 }
  0x1b   :  { %394 = vmatpush3.msra.mxu0 %v101_v24  ;;  %437 = vmatprep.subr.mxu1 %v101_v24 }
  0x1c   :  { %395 = vmatprep.subr.mxu0 %v100_v30  ;;  %453 = vmatpush3.msra.mxu1 %v101_v24 }
  0x1d   :  { %396 = vmatpush3.msra.mxu0 %v100_v30  ;;  %438 = vmatprep.subr.mxu1 %v100_v30 }
  0x1e   :  { %397 = vmatprep.subr.mxu0 %v99_v36  ;;  %454 = vmatpush3.msra.mxu1 %v100_v30 }
  0x1f   :  { %398 = vmatpush3.msra.mxu0 %v99_v36  ;;  %439 = vmatprep.subr.mxu1 %v99_v36 }
  0x20   :  { %399 = vmatprep.subr.mxu0 %v98_v44  ;;  %455 = vmatpush3.msra.mxu1 %v99_v36 }
  0x21   :  { %400 = vmatpush3.msra.mxu0 %v98_v44  ;;  %440 = vmatprep.subr.mxu1 %v98_v44 }
  0x22   :  { %402 = vmatmul.mubr.f32.vlgmr.msra.gmra.mxu0 %v83_v48  ;;  %456 = vmatpush3.msra.mxu1 %v98_v44 }
  0x23   :  { %404 = vmatprep.mubr.f32.mxu0 %v84_v52  ;;  %413 = vmatprep.mubr.f32.mxu1 %v90_v56 }
  0x24   :  { %414 = vmatmul.mubr.f32.vlgmr.msra.gmra.mxu1 %v91_v57 }
  0x25   :  { %416 = vmatprep.mubr.f32.mxu1 %v92_v60 }
  0x26   :  { %405 = vmatmul.mubr.f32.gmra.mxu0 %v85_v0 }
  0x27   :  { %407 = vmatprep.mubr.f32.mxu0 %v86_v3 }
  0x28   :  { %417 = vmatmul.mubr.f32.gmra.mxu1 %v93_v6 }
  0x29   :  { %419 = vmatprep.mubr.f32.mxu1 %v94_v10 }
  0x2a   :  { %408 = vmatmul.mubr.f32.gmra.mxu0 %v87_v12 }
  0x2b   :  { %410 = vmatprep.mubr.f32.mxu0 %v88_v14 }
  0x2c   :  { %420 = vmatmul.mubr.f32.gmra.mxu1 %v95_v15 }
  0x2d   :  { %422 = vmatprep.mubr.f32.mxu1 %v96_v17 }
  0x2e   :  { %411 = vmatmul.mubr.f32.gmra.mxu0 %v89_v18 }
  0x30   :  { %423 = vmatmul.mubr.f32.gmra.mxu1 %v97_v5 }
  0xe2   :  { %v403_v19 = vpop.f32.mrf.mxu0 }
  0xe3   :  { %260 = vst [vmem:[%s688_s4 + $0x8] sm:$0xff] %v403_v19  ;;  %v292_v24 = vmul.f32 %v403_v19, %v403_v19 }
  0xe4   :  { %v180_v20 = vpop.f32.mrf.mxu0  ;;  %v415_v21 = vpop.f32.mrf.mxu1 }
  0xe5   :  { %259 = vst [vmem:[%s688_s4] sm:$0xff] %v180_v20  ;;  %v291_v9 = vmul.f32 %v180_v20, %v180_v20  ;;  %268 = vst [vmem:[%s688_s4 + $0x48] sm:$0xff] %v415_v21  ;;  %v275_v25 = vadd.f32 %v403_v19, %v180_v20  ;;  %v300_v58 = vmul.f32 %v415_v21, %v415_v21 }
  0xe6   :  { %v406_v22 = vpop.f32.mrf.mxu0  ;;  %v220_v23 = vpop.f32.mrf.mxu1 }
  0xe7   :  { %262 = vst [vmem:[%s688_s4 + $0x18] sm:$0xff] %v406_v22  ;;  %267 = vst [vmem:[%s688_s4 + $0x40] sm:$0xff] %v220_v23  ;;  %v307_v28 = vadd.f32 %v292_v24, %v291_v9  ;;  %v294_v33 = vmul.f32 %v406_v22, %v406_v22  ;;  %v299_v57 = vmul.f32 %v220_v23, %v220_v23 }
  0xe8   :  { %v190_v26 = vpop.f32.mrf.mxu0  ;;  %v418_v27 = vpop.f32.mrf.mxu1 }
  0xe9   :  { %261 = vst [vmem:[%s688_s4 + $0x10] sm:$0xff] %v190_v26  ;;  %v276_v29 = vadd.f32 %v275_v25, %v190_v26  ;;  %v293_v30 = vmul.f32 %v190_v26, %v190_v26  ;;  %270 = vst [vmem:[%s688_s4 + $0x58] sm:$0xff] %v418_v27  ;;  %v302_v0 = vmul.f32 %v418_v27, %v418_v27 }
  0xea   :  { %v409_v31 = vpop.f32.mrf.mxu0  ;;  %v230_v32 = vpop.f32.mrf.mxu1 }
  0xeb   :  { %v308_v34 = vadd.f32 %v307_v28, %v293_v30  ;;  %264 = vst [vmem:[%s688_s4 + $0x28] sm:$0xff] %v409_v31  ;;  %v277_v35 = vadd.f32 %v406_v22, %v276_v29  ;;  %269 = vst [vmem:[%s688_s4 + $0x50] sm:$0xff] %v230_v32  ;;  %v296_v43 = vmul.f32 %v409_v31, %v409_v31 }
  0xec   :  { %v200_v36 = vpop.f32.mrf.mxu0  ;;  %v421_v37 = vpop.f32.mrf.mxu1  ;;  %v301_v62 = vmul.f32 %v230_v32, %v230_v32 }
  0xed   :  { %263 = vst [vmem:[%s688_s4 + $0x20] sm:$0xff] %v200_v36  ;;  %v278_v38 = vadd.f32 %v277_v35, %v200_v36  ;;  %v295_v39 = vmul.f32 %v200_v36, %v200_v36  ;;  %v309_v40 = vadd.f32 %v308_v34, %v294_v33  ;;  %272 = vst [vmem:[%s688_s4 + $0x68] sm:$0xff] %v421_v37 }
  0xee   :  { %v412_v41 = vpop.f32.mrf.mxu0  ;;  %v240_v42 = vpop.f32.mrf.mxu1  ;;  %v304_v7 = vmul.f32 %v421_v37, %v421_v37 }
  0xef   :  { %v310_v44 = vadd.f32 %v309_v40, %v295_v39  ;;  %266 = vst [vmem:[%s688_s4 + $0x38] sm:$0xff] %v412_v41  ;;  %v279_v45 = vadd.f32 %v409_v31, %v278_v38  ;;  %271 = vst [vmem:[%s688_s4 + $0x60] sm:$0xff] %v240_v42  ;;  %v298_v52 = vmul.f32 %v412_v41, %v412_v41 }
  0xf0   :  { %v210_v46 = vpop.f32.mrf.mxu0  ;;  %v424_v47 = vpop.f32.mrf.mxu1  ;;  %v303_v4 = vmul.f32 %v240_v42, %v240_v42 }
  0xf1   :  { %265 = vst [vmem:[%s688_s4 + $0x30] sm:$0xff] %v210_v46  ;;  %v280_v48 = vadd.f32 %v279_v45, %v210_v46  ;;  %v297_v49 = vmul.f32 %v210_v46, %v210_v46  ;;  %v311_v50 = vadd.f32 %v310_v44, %v296_v43  ;;  %274 = vst [vmem:[%s688_s4 + $0x78] sm:$0xff] %v424_v47 }
  0xf2   :  { %v250_v51 = vpop.f32.mrf.mxu1  ;;  %v306_v14 = vmul.f32 %v424_v47, %v424_v47 }
  0xf3   :  { %v281_v53 = vadd.f32 %v412_v41, %v280_v48  ;;  %v312_v54 = vadd.f32 %v311_v50, %v297_v49  ;;  %273 = vst [vmem:[%s688_s4 + $0x70] sm:$0xff] %v250_v51  ;;  %v305_v12 = vmul.f32 %v250_v51, %v250_v51 }
  0xf5   :  { %v313_v55 = vadd.f32 %v312_v54, %v298_v52  ;;  %v282_v56 = vadd.f32 %v281_v53, %v220_v23 }
  0xf7   :  { %v314_v59 = vadd.f32 %v313_v55, %v299_v57  ;;  %v283_v60 = vadd.f32 %v415_v21, %v282_v56 }
  0xf9   :  { %v284_v61 = vadd.f32 %v283_v60, %v230_v32  ;;  %v315_v63 = vadd.f32 %v314_v59, %v300_v58 }
  0xfb   :  { %v316_v1 = vadd.f32 %v315_v63, %v301_v62  ;;  %v285_v2 = vadd.f32 %v418_v27, %v284_v61 }
  0xfd   :  { %v286_v3 = vadd.f32 %v285_v2, %v240_v42  ;;  %v317_v6 = vadd.f32 %v316_v1, %v302_v0 }
  0xff   :  { %v318_v8 = vadd.f32 %v317_v6, %v303_v4  ;;  %v287_v10 = vadd.f32 %v421_v37, %v286_v3 }
 0x101   :  { %v288_v11 = vadd.f32 %v287_v10, %v250_v51  ;;  %v319_v13 = vadd.f32 %v318_v8, %v304_v7 }
 0x103   :  { %v289_v15 = vadd.f32 %v424_v47, %v288_v11  ;;  %v320_v16 = vadd.f32 %v319_v13, %v305_v12 }
 0x105   :  { %290 = vst [vmem:[%s689_s5] sm:$0xff] %v289_v15  ;;  %v321_v17 = vadd.f32 %v320_v16, %v306_v14 }
 0x107   :  { %322 = vst [vmem:[%s690_s6] sm:$0xff] %v321_v17 }

// kernel: preact_bottleneck.6
= control target key start
LH: loop header
LB: loop body
LE: loop exit
PB: predicated region body
PF: predicated region fallthrough
CT: control target
= control target key end

     0   :  { %s2841_s21 = smov 0   ;;  %s3536_s0 = inlined_call_operand.vmem [shape: f32[2,8,8,128], index: 0, kind: input, shape index: {}]   ;;  %s3537_s1 = inlined_call_operand.vmem [shape: f32[1,128], index: 1, kind: input, shape index: {}]   ;;  %s3538_s2 = inlined_call_operand.vmem [shape: f32[1,128], index: 2, kind: input, shape index: {}]   ;;  %s3539_s3 = inlined_call_operand.vmem [shape: f32[9,128,128], index: 3, kind: input, shape index: {}]   ;;  %s3540_s4 = inlined_call_operand.vmem [shape: f32[2,8,8,128], index: 4, kind: output, shape index: {0}]   ;;  %s3541_s5 = inlined_call_operand.vmem [shape: f32[2,8,128], index: 5, kind: output, shape index: {1}]   ;;  %s3542_s6 = inlined_call_operand.vmem [shape: f32[2,8,128], index: 6, kind: output, shape index: {2}]  }
   0x1 LB: > { %s1999_s22 = sadd.s32 4294967295, %s2803_s21   ;;  %p2003_p0 = scmp.ge.s32.totalorder %s2803_s21, 1  ;;  %s2803_s21 = sphi %s2841_s21, %s17_s21  }
   0x2   : > { %p217_p1 = scmp.lt.s32.totalorder %s2803_s21, 3 }
   0x4   : > { %p218_p2 = pnand %p2003_p0, %p217_p1 }
   0x6   : > { %221 = sbr.rel (%p218_p2) target bundleno = 421 (0x1a5), region = 36 }
   0xb   : > { %v2027_v0 = vld [vmem:[%s3539_s3 + $0xf8] sm:$0xff]  ;;  %v2026_v2 = vld [vmem:[%s3539_s3 + $0xf0] sm:$0xff]  ;;  %p255_p3 = scmp.lt.s32.totalorder %s1999_s22, 1  ;;  %v2025_v4 = vld [vmem:[%s3539_s3 + $0xe8] sm:$0xff]  ;;  %v2805_v36 = vmov 0.0   ;;  %vm398_vm0 = vcmask 1040384  }
   0xc   : > { %v446_v1 = vld [vmem:[%s3539_s3 + $0x78] sm:$0xff]  ;;  %2360 = vmatprep.subr.mxu0 %v2027_v0  ;;  %v445_v3 = vld [vmem:[%s3539_s3 + $0x70] sm:$0xff]  ;;  %v444_v5 = vld [vmem:[%s3539_s3 + $0x68] sm:$0xff]  ;;  %v2965_v37 = vrot.slane %v2805_v36, 7  ;;  %2392 = vmatprep.mubr.f32.mxu0 %v2805_v36  ;;  %vm682_vm1 = vcmask 1046528  }
   0xd   : > { %2404 = vmatprep.subr.mxu1 %v446_v1  ;;  %2361 = vmatpush3.msra.mxu0 %v2027_v0  ;;  %s3552_s22 = smov (!%p255_p3, %s1999_s22), 1  ;;  %v2024_v6 = vld [vmem:[%s3539_s3 + $0xe0] sm:$0xff]  ;;  %v2023_v8 = vld [vmem:[%s3539_s3 + $0xd8] sm:$0xff]  ;;  %v2022_v10 = vld [vmem:[%s3539_s3 + $0xd0] sm:$0xff] }
   0xe   : > { %2405 = vmatpush3.msra.mxu1 %v446_v1  ;;  %2362 = vmatprep.subr.mxu0 %v2026_v2  ;;  %v443_v7 = vld [vmem:[%s3539_s3 + $0x60] sm:$0xff]  ;;  %v442_v9 = vld [vmem:[%s3539_s3 + $0x58] sm:$0xff]  ;;  %s2142_s19 = sshll.u32 %s3552_s22, 6  ;;  %v441_v11 = vld [vmem:[%s3539_s3 + $0x50] sm:$0xff] }
   0xf   : > { %2406 = vmatprep.subr.mxu1 %v445_v3  ;;  %2363 = vmatpush3.msra.mxu0 %v2026_v2  ;;  %s2893_s28 = scalar_lea.vmem %s3536_s0, %s2142_s19  ;;  %v2021_v12 = vld [vmem:[%s3539_s3 + $0xc8] sm:$0xff]  ;;  %v2020_v14 = vld [vmem:[%s3539_s3 + $0xc0] sm:$0xff]  ;;  %v2019_v18 = vld [vmem:[%s3539_s3 + $0xb8] sm:$0xff]  ;;  %s3514_s7 = scalar_lea.vmem %s3540_s4, %s2142_s19 }
  0x10   : > { %2407 = vmatpush3.msra.mxu1 %v445_v3  ;;  %2364 = vmatprep.subr.mxu0 %v2025_v4  ;;  %v440_v13 = vld [vmem:[%s3539_s3 + $0x48] sm:$0xff]  ;;  %v439_v15 = vld [vmem:[%s3539_s3 + $0x40] sm:$0xff]  ;;  %v438_v19 = vld [vmem:[%s3539_s3 + $0x38] sm:$0xff]  ;;  %s2008_s19 = sshll.u32 %s3552_s22, 3 }
  0x11   : > { %2408 = vmatprep.subr.mxu1 %v444_v5  ;;  %2365 = vmatpush3.msra.mxu0 %v2025_v4  ;;  %v2910_v16 = vld [vmem:[%s3537_s1] ss:$0 sm:$0xff]  ;;  %v2018_v21 = vld [vmem:[%s3539_s3 + $0xb0] sm:$0xff]  ;;  %v2017_v24 = vld [vmem:[%s3539_s3 + $0xa8] sm:$0xff]  ;;  %s268_s10 = scalar_lea.vmem %s3541_s5, %s2008_s19  ;;  %s272_s13 = scalar_lea.vmem %s3542_s6, %s2008_s19 }
  0x12   : > { %2409 = vmatpush3.msra.mxu1 %v444_v5  ;;  %2366 = vmatprep.subr.mxu0 %v2024_v6  ;;  %v275_v17 = vld [vmem:[%s2893_s28] sm:$0xff]  ;;  %v437_v22 = vld [vmem:[%s3539_s3 + $0x30] sm:$0xff]  ;;  %v436_v25 = vld [vmem:[%s3539_s3 + $0x28] sm:$0xff] }
  0x13   : > { %2410 = vmatprep.subr.mxu1 %v443_v7  ;;  %2367 = vmatpush3.msra.mxu0 %v2024_v6  ;;  %v289_v20 = vmul.f32 %v2910_v16, %v275_v17  ;;  %v2929_v23 = vld [vmem:[%s3538_s2] ss:$0 sm:$0xff]  ;;  %v2015_v29 = vld [vmem:[%s3539_s3 + $0x98] sm:$0xff]  ;;  %v2014_v32 = vld [vmem:[%s3539_s3 + $0x90] sm:$0xff] }
  0x14   : > { %2411 = vmatpush3.msra.mxu1 %v443_v7  ;;  %2368 = vmatprep.subr.mxu0 %v2023_v8  ;;  %v2016_v27 = vld [vmem:[%s3539_s3 + $0xa0] sm:$0xff]  ;;  %v434_v30 = vld [vmem:[%s3539_s3 + $0x18] sm:$0xff]  ;;  %v433_v33 = vld [vmem:[%s3539_s3 + $0x10] sm:$0xff] }
  0x15   : > { %2412 = vmatprep.subr.mxu1 %v442_v9  ;;  %2369 = vmatpush3.msra.mxu0 %v2023_v8  ;;  %v303_v26 = vadd.f32 %v2929_v23, %v289_v20  ;;  %v435_v28 = vld [vmem:[%s3539_s3 + $0x20] sm:$0xff]  ;;  %v2013_v34 = vld [vmem:[%s3539_s3 + $0x88] sm:$0xff]  ;;  %v2043_v43 = vld [vmem:[%s3539_s3 + $0x178] sm:$0xff] }
  0x16   : > { %2413 = vmatpush3.msra.mxu1 %v442_v9  ;;  %2370 = vmatprep.subr.mxu0 %v2022_v10  ;;  %v432_v35 = vld [vmem:[%s3539_s3 + $0x8] sm:$0xff]  ;;  %v2012_v39 = vld [vmem:[%s3539_s3 + $0x80] sm:$0xff]  ;;  %v2059_v44 = vld [vmem:[%s3539_s3 + $0x1f8] sm:$0xff] }
  0x17   : > { %2414 = vmatprep.subr.mxu1 %v441_v11  ;;  %2371 = vmatpush3.msra.mxu0 %v2022_v10  ;;  %v2950_v31 = vmax.f32 %v303_v26, 0.0  ;;  %v431_v40 = vld [vmem:[%s3539_s3] sm:$0xff]  ;;  %v276_v42 = vld [vmem:[%s2893_s28 + $0x8] sm:$0xff]  ;;  %v277_v45 = vld [vmem:[%s2893_s28 + $0x10] sm:$0xff] }
  0x18   : > { %2415 = vmatpush3.msra.mxu1 %v441_v11  ;;  %2372 = vmatprep.subr.mxu0 %v2021_v12  ;;  %v2042_v46 = vld [vmem:[%s3539_s3 + $0x170] sm:$0xff]  ;;  %v290_v48 = vmul.f32 %v2910_v16, %v276_v42  ;;  %v2041_v49 = vld [vmem:[%s3539_s3 + $0x168] sm:$0xff]  ;;  %v291_v51 = vmul.f32 %v2910_v16, %v277_v45  ;;  %v278_v52 = vld [vmem:[%s2893_s28 + $0x18] sm:$0xff] }
  0x19   : > { %2416 = vmatprep.subr.mxu1 %v440_v13  ;;  %2373 = vmatpush3.msra.mxu0 %v2021_v12  ;;  %v403_v38 = vrot.slane %v2950_v31, 7  ;;  %v2058_v47 = vld [vmem:[%s3539_s3 + $0x1f0] sm:$0xff]  ;;  %v2057_v50 = vld [vmem:[%s3539_s3 + $0x1e8] sm:$0xff]  ;;  %v2040_v53 = vld [vmem:[%s3539_s3 + $0x160] sm:$0xff]  ;;  %v292_v60 = vmul.f32 %v2910_v16, %v278_v52 }
  0x1a   : > { %2417 = vmatpush3.msra.mxu1 %v440_v13  ;;  %2374 = vmatprep.subr.mxu0 %v2020_v14  ;;  %v2056_v54 = vld [vmem:[%s3539_s3 + $0x1e0] sm:$0xff]  ;;  %v304_v55 = vadd.f32 %v2929_v23, %v290_v48  ;;  %v2039_v57 = vld [vmem:[%s3539_s3 + $0x158] sm:$0xff]  ;;  %v305_v59 = vadd.f32 %v2929_v23, %v291_v51  ;;  %v2038_v61 = vld [vmem:[%s3539_s3 + $0x150] sm:$0xff]  ;;  %v3137_v48 = vrot.slane %v2805_v36, 1  ;;  %v686_v51 = vrot.slane %v2950_v31, 1 }
  0x1b   : > { %2418 = vmatprep.subr.mxu1 %v439_v15  ;;  %2375 = vmatpush3.msra.mxu0 %v2020_v14  ;;  %v2976_v41 = vsel %vm398_vm0, %v2965_v37, %v403_v38  ;;  %v279_v56 = vld [vmem:[%s2893_s28 + $0x20] sm:$0xff]  ;;  %v2055_v58 = vld [vmem:[%s3539_s3 + $0x1d8] sm:$0xff]  ;;  %v2054_v62 = vld [vmem:[%s3539_s3 + $0x1d0] sm:$0xff]  ;;  %v306_v5 = vadd.f32 %v2929_v23, %v292_v60 }
  0x1c   : > { %2419 = vmatpush3.msra.mxu1 %v439_v15  ;;  %2376 = vmatprep.subr.mxu0 %v2019_v18  ;;  %v3027_v63 = vmax.f32 %v304_v55, 0.0  ;;  %v293_v0 = vmul.f32 %v2910_v16, %v279_v56  ;;  %v280_v1 = vld [vmem:[%s2893_s28 + $0x28] sm:$0xff]  ;;  %v3037_v4 = vmax.f32 %v305_v59, 0.0  ;;  %v281_v6 = vld [vmem:[%s2893_s28 + $0x30] sm:$0xff]  ;;  %v2036_v7 = vld [vmem:[%s3539_s3 + $0x140] sm:$0xff] }
  0x1d   : > { %2420 = vmatprep.subr.mxu1 %v438_v19  ;;  %2377 = vmatpush3.msra.mxu0 %v2019_v18  ;;  %v2037_v2 = vld [vmem:[%s3539_s3 + $0x148] sm:$0xff]  ;;  %v2052_v8 = vld [vmem:[%s3539_s3 + $0x1c0] sm:$0xff]  ;;  %v294_v11 = vmul.f32 %v2910_v16, %v280_v1  ;;  %v2035_v12 = vld [vmem:[%s3539_s3 + $0x138] sm:$0xff]  ;;  %v3057_v15 = vmax.f32 %v306_v5, 0.0  ;;  %v295_v17 = vmul.f32 %v2910_v16, %v281_v6 }
  0x1e   : > { %2421 = vmatpush3.msra.mxu1 %v438_v19  ;;  %2378 = vmatprep.subr.mxu0 %v2018_v21  ;;  %v2053_v3 = vld [vmem:[%s3539_s3 + $0x1c8] sm:$0xff]  ;;  %v406_v9 = vrot.slane %v3027_v63, 7  ;;  %v307_v10 = vadd.f32 %v2929_v23, %v293_v0  ;;  %v2051_v13 = vld [vmem:[%s3539_s3 + $0x1b8] sm:$0xff]  ;;  %v409_v14 = vrot.slane %v3037_v4, 7  ;;  %v2030_v45 = vld [vmem:[%s3539_s3 + $0x110] sm:$0xff]  ;;  %v689_v56 = vrot.slane %v3027_v63, 1 }
  0x1f   : > { %2422 = vmatprep.subr.mxu1 %v437_v22  ;;  %2379 = vmatpush3.msra.mxu0 %v2018_v21  ;;  %v308_v20 = vadd.f32 %v2929_v23, %v294_v11  ;;  %v2034_v21 = vld [vmem:[%s3539_s3 + $0x130] sm:$0xff]  ;;  %v309_v26 = vadd.f32 %v2929_v23, %v295_v17  ;;  %v2047_v42 = vld [vmem:[%s3539_s3 + $0x198] sm:$0xff]  ;;  %v2028_v52 = vld [vmem:[%s3539_s3 + $0x100] sm:$0xff] }
  0x20   : > { %2423 = vmatpush3.msra.mxu1 %v437_v22  ;;  %2380 = vmatprep.subr.mxu0 %v2017_v24  ;;  %v3062_v18 = vsel %vm398_vm0, %v2965_v37, %v406_v9  ;;  %v3064_v19 = vmax.f32 %v307_v10, 0.0  ;;  %v2050_v22 = vld [vmem:[%s3539_s3 + $0x1b0] sm:$0xff]  ;;  %v2075_v55 = vld [vmem:[%s3539_s3 + $0x278] sm:$0xff]  ;;  %v2073_v1 = vld [vmem:[%s3539_s3 + $0x268] sm:$0xff] }
  0x21   : > { %2424 = vmatprep.subr.mxu1 %v436_v25  ;;  %2381 = vmatpush3.msra.mxu0 %v2017_v24  ;;  %v3075_v24 = vsel %vm398_vm0, %v2965_v37, %v409_v14  ;;  %v282_v59 = vld [vmem:[%s2893_s28 + $0x38] sm:$0xff]  ;;  %v2074_v60 = vld [vmem:[%s3539_s3 + $0x270] sm:$0xff]  ;;  %v2088_v6 = vld [vmem:[%s3539_s3 + $0x2e0] sm:$0xff] }
  0x22   : > { %2425 = vmatpush3.msra.mxu1 %v436_v25  ;;  %2382 = vmatprep.subr.mxu0 %v2016_v27  ;;  %v412_v25 = vrot.slane %v3057_v15, 7  ;;  %v296_v0 = vmul.f32 %v2910_v16, %v282_v59  ;;  %v698_v5 = vrot.slane %v3064_v19, 1  ;;  %v2072_v16 = vld [vmem:[%s3539_s3 + $0x260] sm:$0xff]  ;;  %v2087_v10 = vld [vmem:[%s3539_s3 + $0x2d8] sm:$0xff]  ;;  %v2070_v14 = vld [vmem:[%s3539_s3 + $0x250] sm:$0xff] }
  0x23   : > { %2426 = vmatprep.subr.mxu1 %v435_v28  ;;  %2383 = vmatpush3.msra.mxu0 %v2016_v27  ;;  %v2033_v27 = vld [vmem:[%s3539_s3 + $0x128] sm:$0xff]  ;;  %v2086_v17 = vld [vmem:[%s3539_s3 + $0x2d0] sm:$0xff]  ;;  %v2123_v59 = vld [vmem:[%s3539_s3 + $0x3f8] sm:$0xff] }
  0x24   : > { %2427 = vmatpush3.msra.mxu1 %v435_v28  ;;  %2384 = vmatprep.subr.mxu0 %v2015_v29  ;;  %v2049_v28 = vld [vmem:[%s3539_s3 + $0x1a8] sm:$0xff]  ;;  %v3210_v9 = vsel %vm682_vm1, %v698_v5, %v3137_v48  ;;  %v2102_v5 = vld [vmem:[%s3539_s3 + $0x350] sm:$0xff] }
  0x25   : > { %2428 = vmatprep.subr.mxu1 %v434_v30  ;;  %2385 = vmatpush3.msra.mxu0 %v2015_v29  ;;  %v415_v29 = vrot.slane %v3064_v19, 7 }
  0x26   : > { %2429 = vmatpush3.msra.mxu1 %v434_v30  ;;  %2386 = vmatprep.subr.mxu0 %v2014_v32  ;;  %v3088_v30 = vmax.f32 %v308_v20, 0.0 }
  0x27   : > { %2430 = vmatprep.subr.mxu1 %v433_v33  ;;  %2387 = vmatpush3.msra.mxu0 %v2014_v32  ;;  %v3094_v32 = vsel %vm398_vm0, %v2965_v37, %v412_v25  ;;  %v3106_v38 = vsel %vm398_vm0, %v2965_v37, %v415_v29  ;;  %v2069_v25 = vld [vmem:[%s3539_s3 + $0x248] sm:$0xff]  ;;  %v2084_v29 = vld [vmem:[%s3539_s3 + $0x2c0] sm:$0xff] }
  0x28   : > { %2431 = vmatpush3.msra.mxu1 %v433_v33  ;;  %2388 = vmatprep.subr.mxu0 %v2013_v34  ;;  %v3096_v33 = vmax.f32 %v309_v26, 0.0  ;;  %v701_v11 = vrot.slane %v3088_v30, 1  ;;  %v2085_v26 = vld [vmem:[%s3539_s3 + $0x2c8] sm:$0xff] }
  0x29   : > { %2432 = vmatprep.subr.mxu1 %v432_v35  ;;  %2389 = vmatpush3.msra.mxu0 %v2013_v34  ;;  %v2032_v34 = vld [vmem:[%s3539_s3 + $0x120] sm:$0xff] }
  0x2a   : > { %2433 = vmatpush3.msra.mxu1 %v432_v35  ;;  %2390 = vmatprep.subr.mxu0 %v2012_v39  ;;  %v2048_v35 = vld [vmem:[%s3539_s3 + $0x1a0] sm:$0xff]  ;;  %v3234_v20 = vsel %vm682_vm1, %v701_v11, %v3137_v48 }
  0x2b   : > { %2434 = vmatprep.subr.mxu1 %v431_v40  ;;  %2391 = vmatpush3.msra.mxu0 %v2012_v39  ;;  %v418_v39 = vrot.slane %v3088_v30, 7 }
  0x2c   : > { %2435 = vmatpush3.msra.mxu1 %v431_v40  ;;  %2436 = vmatprep.mubr.f32.mxu1 %v2965_v37  ;;  %v2031_v40 = vld [vmem:[%s3539_s3 + $0x118] sm:$0xff] }
  0x2d   : > { %2393 = vmatmul.mubr.f32.vlgmr.msra.gmra.mxu0 %v2950_v31  ;;  %2437 = vmatmul.mubr.f32.vlgmr.msra.gmra.mxu1 %v2976_v41 }
  0x2e   : > { %2448 = vmatprep.subr.mxu0 %v2043_v43  ;;  %2492 = vmatprep.subr.mxu1 %v2059_v44 }
  0x2f   : > { %2449 = vmatpush3.msra.mxu0 %v2043_v43  ;;  %2493 = vmatpush3.msra.mxu1 %v2059_v44  ;;  %v421_v43 = vrot.slane %v3096_v33, 7  ;;  %v3122_v44 = vsel %vm398_vm0, %v2965_v37, %v418_v39  ;;  %v2066_v39 = vld [vmem:[%s3539_s3 + $0x230] sm:$0xff] }
  0x30   : > { %2450 = vmatprep.subr.mxu0 %v2042_v46  ;;  %2494 = vmatprep.subr.mxu1 %v2058_v47 }
  0x31   : > { %2451 = vmatpush3.msra.mxu0 %v2042_v46  ;;  %2495 = vmatpush3.msra.mxu1 %v2058_v47  ;;  %v2046_v46 = vld [vmem:[%s3539_s3 + $0x190] sm:$0xff]  ;;  %v3132_v47 = vsel %vm398_vm0, %v2965_v37, %v421_v43  ;;  %v2081_v43 = vld [vmem:[%s3539_s3 + $0x2a8] sm:$0xff] }
  0x32   : > { %2452 = vmatprep.subr.mxu0 %v2041_v49  ;;  %2496 = vmatprep.subr.mxu1 %v2057_v50 }
  0x33   : > { %2453 = vmatpush3.msra.mxu0 %v2041_v49  ;;  %2497 = vmatpush3.msra.mxu1 %v2057_v50  ;;  %v2029_v49 = vld [vmem:[%s3539_s3 + $0x108] sm:$0xff] }
  0x34   : > { %2454 = vmatprep.subr.mxu0 %v2040_v53  ;;  %2498 = vmatprep.subr.mxu1 %v2056_v54  ;;  %v2045_v50 = vld [vmem:[%s3539_s3 + $0x188] sm:$0xff] }
  0x35   : > { %2455 = vmatpush3.msra.mxu0 %v2040_v53  ;;  %2499 = vmatpush3.msra.mxu1 %v2056_v54  ;;  %v2044_v53 = vld [vmem:[%s3539_s3 + $0x180] sm:$0xff]  ;;  %v3156_v54 = vsel %vm682_vm1, %v686_v51, %v3137_v48  ;;  %v2062_v51 = vld [vmem:[%s3539_s3 + $0x210] sm:$0xff] }
  0x36   : > { %2456 = vmatprep.subr.mxu0 %v2039_v57  ;;  %2500 = vmatprep.subr.mxu1 %v2055_v58 }
  0x37   : > { %2457 = vmatpush3.msra.mxu0 %v2039_v57  ;;  %2501 = vmatpush3.msra.mxu1 %v2055_v58  ;;  %v2091_v57 = vld [vmem:[%s3539_s3 + $0x2f8] sm:$0xff]  ;;  %v692_v58 = vrot.slane %v3037_v4, 1 }
  0x38   : > { %2458 = vmatprep.subr.mxu0 %v2038_v61  ;;  %2502 = vmatprep.subr.mxu1 %v2054_v62 }
  0x39   : > { %2459 = vmatpush3.msra.mxu0 %v2038_v61  ;;  %2503 = vmatpush3.msra.mxu1 %v2054_v62  ;;  %v2090_v61 = vld [vmem:[%s3539_s3 + $0x2f0] sm:$0xff]  ;;  %v3179_v62 = vsel %vm682_vm1, %v689_v56, %v3137_v48  ;;  %v2060_v56 = vld [vmem:[%s3539_s3 + $0x200] sm:$0xff] }
  0x3a   : > { %2460 = vmatprep.subr.mxu0 %v2037_v2  ;;  %2504 = vmatprep.subr.mxu1 %v2053_v3 }
  0x3b   : > { %2461 = vmatpush3.msra.mxu0 %v2037_v2  ;;  %2505 = vmatpush3.msra.mxu1 %v2053_v3  ;;  %v2089_v2 = vld [vmem:[%s3539_s3 + $0x2e8] sm:$0xff]  ;;  %v695_v3 = vrot.slane %v3057_v15, 1 }
  0x3c   : > { %2462 = vmatprep.subr.mxu0 %v2036_v7  ;;  %2506 = vmatprep.subr.mxu1 %v2052_v8 }
  0x3d   : > { %2463 = vmatpush3.msra.mxu0 %v2036_v7  ;;  %2507 = vmatpush3.msra.mxu1 %v2052_v8  ;;  %v310_v7 = vadd.f32 %v2929_v23, %v296_v0  ;;  %v3206_v8 = vsel %vm682_vm1, %v695_v3, %v3137_v48  ;;  %v2071_v23 = vld [vmem:[%s3539_s3 + $0x258] sm:$0xff]  ;;  %v2104_v0 = vld [vmem:[%s3539_s3 + $0x360] sm:$0xff] }
  0x3e   : > { %2464 = vmatprep.subr.mxu0 %v2035_v12  ;;  %2508 = vmatprep.subr.mxu1 %v2051_v13  ;;  %v2119_v3 = vld [vmem:[%s3539_s3 + $0x3d8] sm:$0xff] }
  0x3f   : > { %2465 = vmatpush3.msra.mxu0 %v2035_v12  ;;  %2509 = vmatpush3.msra.mxu1 %v2051_v13  ;;  %v704_v12 = vrot.slane %v3096_v33, 1  ;;  %v3222_v13 = vmax.f32 %v310_v7, 0.0  ;;  %v2101_v7 = vld [vmem:[%s3539_s3 + $0x348] sm:$0xff] }
  0x40   : > { %2395 = vmatprep.mubr.f32.mxu0 %v3027_v63  ;;  %2439 = vmatprep.mubr.f32.mxu1 %v3062_v18 }
  0x41   : > { %2466 = vmatprep.subr.mxu0 %v2034_v21  ;;  %2510 = vmatprep.subr.mxu1 %v2050_v22 }
  0x42   : > { %2396 = vmatmul.mubr.f32.gmra.mxu0 %v3037_v4  ;;  %2440 = vmatmul.mubr.f32.gmra.mxu1 %v3075_v24 }
  0x43   : > { %2467 = vmatpush3.msra.mxu0 %v2034_v21  ;;  %2511 = vmatpush3.msra.mxu1 %v2050_v22  ;;  %v3238_v21 = vsel %vm682_vm1, %v704_v12, %v3137_v48  ;;  %v907_v22 = vrot.slane %v3222_v13, 7  ;;  %v2116_v12 = vld [vmem:[%s3539_s3 + $0x3c0] sm:$0xff] }
  0x44   : > { %2468 = vmatprep.subr.mxu0 %v2033_v27  ;;  %2512 = vmatprep.subr.mxu1 %v2049_v28 }
  0x45   : > { %2469 = vmatpush3.msra.mxu0 %v2033_v27  ;;  %2513 = vmatpush3.msra.mxu1 %v2049_v28  ;;  %v2068_v27 = vld [vmem:[%s3539_s3 + $0x240] sm:$0xff]  ;;  %v3255_v28 = vsel %vm398_vm0, %v2965_v37, %v907_v22  ;;  %v2098_v22 = vld [vmem:[%s3539_s3 + $0x330] sm:$0xff] }
  0x46   : > { %2398 = vmatprep.mubr.f32.mxu0 %v3057_v15  ;;  %2442 = vmatprep.mubr.f32.mxu1 %v3094_v32 }
  0x47   : > { %2470 = vmatprep.subr.mxu0 %v2032_v34  ;;  %2514 = vmatprep.subr.mxu1 %v2048_v35 }
  0x48   : > { %2399 = vmatmul.mubr.f32.gmra.mxu0 %v3064_v19  ;;  %2443 = vmatmul.mubr.f32.gmra.mxu1 %v3106_v38 }
  0x49   : > { %2471 = vmatpush3.msra.mxu0 %v2032_v34  ;;  %2515 = vmatpush3.msra.mxu1 %v2048_v35  ;;  %v2067_v34 = vld [vmem:[%s3539_s3 + $0x238] sm:$0xff] }
  0x4a   : > { %2472 = vmatprep.subr.mxu0 %v2031_v40  ;;  %2516 = vmatprep.subr.mxu1 %v2047_v42  ;;  %v2083_v35 = vld [vmem:[%s3539_s3 + $0x2b8] sm:$0xff] }
  0x4b   : > { %2473 = vmatpush3.msra.mxu0 %v2031_v40  ;;  %2517 = vmatpush3.msra.mxu1 %v2047_v42  ;;  %v2082_v40 = vld [vmem:[%s3539_s3 + $0x2b0] sm:$0xff]  ;;  %v2065_v42 = vld [vmem:[%s3539_s3 + $0x228] sm:$0xff] }
  0x4c   : > { %2401 = vmatprep.mubr.f32.mxu0 %v3088_v30  ;;  %2445 = vmatprep.mubr.f32.mxu1 %v3122_v44 }
  0x4d   : > { %2474 = vmatprep.subr.mxu0 %v2030_v45  ;;  %2518 = vmatprep.subr.mxu1 %v2046_v46 }
  0x4e   : > { %2402 = vmatmul.mubr.f32.gmra.mxu0 %v3096_v33  ;;  %2446 = vmatmul.mubr.f32.gmra.mxu1 %v3132_v47 }
  0x4f   : > { %2475 = vmatpush3.msra.mxu0 %v2030_v45  ;;  %2519 = vmatpush3.msra.mxu1 %v2046_v46  ;;  %v2064_v45 = vld [vmem:[%s3539_s3 + $0x220] sm:$0xff] }
  0x50   : > { %2476 = vmatprep.subr.mxu0 %v2029_v49  ;;  %2520 = vmatprep.subr.mxu1 %v2045_v50  ;;  %v2080_v46 = vld [vmem:[%s3539_s3 + $0x2a0] sm:$0xff] }
  0x51   : > { %2477 = vmatpush3.msra.mxu0 %v2029_v49  ;;  %2521 = vmatpush3.msra.mxu1 %v2045_v50  ;;  %v2063_v49 = vld [vmem:[%s3539_s3 + $0x218] sm:$0xff] }
  0x52   : > { %2478 = vmatprep.subr.mxu0 %v2028_v52  ;;  %2522 = vmatprep.subr.mxu1 %v2044_v53  ;;  %v2079_v50 = vld [vmem:[%s3539_s3 + $0x298] sm:$0xff] }
  0x53   : > { %2479 = vmatpush3.msra.mxu0 %v2028_v52  ;;  %2480 = vmatprep.mubr.f32.mxu0 %v3137_v48  ;;  %v2078_v52 = vld [vmem:[%s3539_s3 + $0x290] sm:$0xff] }
  0x54   : > { %2523 = vmatpush3.msra.mxu1 %v2044_v53  ;;  %2481 = vmatmul.mubr.f32.vlgmr.msra.gmra.mxu0 %v3156_v54  ;;  %v2061_v53 = vld [vmem:[%s3539_s3 + $0x208] sm:$0xff] }
  0x55   : > { %2524 = vmatprep.mubr.f32.mxu1 %v2976_v41  ;;  %2536 = vmatprep.subr.mxu0 %v2075_v55  ;;  %v3183_v41 = vsel %vm682_vm1, %v692_v58, %v3137_v48  ;;  %v2107_v58 = vld [vmem:[%s3539_s3 + $0x378] sm:$0xff] }
  0x56   : > { %2580 = vmatprep.subr.mxu1 %v2091_v57  ;;  %2525 = vmatmul.mubr.f32.vlgmr.msra.gmra.mxu1 %v3062_v18 }
  0x57   : > { %2537 = vmatpush3.msra.mxu0 %v2075_v55  ;;  %2581 = vmatpush3.msra.mxu1 %v2091_v57  ;;  %v2077_v55 = vld [vmem:[%s3539_s3 + $0x288] sm:$0xff]  ;;  %v2076_v57 = vld [vmem:[%s3539_s3 + $0x280] sm:$0xff] }
  0x58   : > { %2538 = vmatprep.subr.mxu0 %v2074_v60  ;;  %2582 = vmatprep.subr.mxu1 %v2090_v61 }
  0x59   : > { %2483 = vmatprep.mubr.f32.mxu0 %v3179_v62  ;;  %2539 = vmatpush3.msra.mxu0 %v2074_v60  ;;  %v2106_v60 = vld [vmem:[%s3539_s3 + $0x370] sm:$0xff] }
  0x5a   : > { %2583 = vmatpush3.msra.mxu1 %v2090_v61  ;;  %2484 = vmatmul.mubr.f32.gmra.mxu0 %v3183_v41  ;;  %v2122_v61 = vld [vmem:[%s3539_s3 + $0x3f0] sm:$0xff] }
  0x5b   : > { %2540 = vmatprep.subr.mxu0 %v2073_v1  ;;  %2584 = vmatprep.subr.mxu1 %v2089_v2 }
  0x5c   : > { %2527 = vmatprep.mubr.f32.mxu1 %v3075_v24  ;;  %2541 = vmatpush3.msra.mxu0 %v2073_v1  ;;  %v2120_v1 = vld [vmem:[%s3539_s3 + $0x3e0] sm:$0xff] }
  0x5d   : > { %2585 = vmatpush3.msra.mxu1 %v2089_v2  ;;  %2542 = vmatprep.subr.mxu0 %v2072_v16  ;;  %v2103_v2 = vld [vmem:[%s3539_s3 + $0x358] sm:$0xff] }
  0x5e   : > { %2528 = vmatmul.mubr.f32.gmra.mxu1 %v3094_v32  ;;  %2586 = vmatprep.subr.mxu1 %v2088_v6 }
  0x5f   : > { %2486 = vmatprep.mubr.f32.mxu0 %v3206_v8  ;;  %2543 = vmatpush3.msra.mxu0 %v2072_v16  ;;  %v2118_v16 = vld [vmem:[%s3539_s3 + $0x3d0] sm:$0xff] }
  0x60   : > { %2587 = vmatpush3.msra.mxu1 %v2088_v6  ;;  %2487 = vmatmul.mubr.f32.gmra.mxu0 %v3210_v9  ;;  %v1206_v6 = vrot.slane %v3222_v13, 1 }
  0x61   : > { %2544 = vmatprep.subr.mxu0 %v2071_v23  ;;  %2588 = vmatprep.subr.mxu1 %v2087_v10 }
  0x62   : > { %2530 = vmatprep.mubr.f32.mxu1 %v3106_v38  ;;  %2545 = vmatpush3.msra.mxu0 %v2071_v23  ;;  %v2117_v23 = vld [vmem:[%s3539_s3 + $0x3c8] sm:$0xff]  ;;  %v3372_v11 = vsel %vm682_vm1, %v1206_v6, %v3137_v48 }
  0x63   : > { %2589 = vmatpush3.msra.mxu1 %v2087_v10  ;;  %2546 = vmatprep.subr.mxu0 %v2070_v14  ;;  %v2100_v10 = vld [vmem:[%s3539_s3 + $0x340] sm:$0xff] }
  0x64   : > { %2531 = vmatmul.mubr.f32.gmra.mxu1 %v3122_v44  ;;  %2590 = vmatprep.subr.mxu1 %v2086_v17 }
  0x65   : > { %2489 = vmatprep.mubr.f32.mxu0 %v3234_v20  ;;  %2547 = vmatpush3.msra.mxu0 %v2070_v14  ;;  %v2099_v14 = vld [vmem:[%s3539_s3 + $0x338] sm:$0xff] }
  0x66   : > { %2591 = vmatpush3.msra.mxu1 %v2086_v17  ;;  %2490 = vmatmul.mubr.f32.gmra.mxu0 %v3238_v21  ;;  %v2115_v17 = vld [vmem:[%s3539_s3 + $0x3b8] sm:$0xff] }
  0x67   : > { %2548 = vmatprep.subr.mxu0 %v2069_v25  ;;  %2592 = vmatprep.subr.mxu1 %v2085_v26 }
  0x68   : > { %2533 = vmatprep.mubr.f32.mxu1 %v3132_v47  ;;  %2549 = vmatpush3.msra.mxu0 %v2069_v25  ;;  %v2114_v25 = vld [vmem:[%s3539_s3 + $0x3b0] sm:$0xff] }
  0x69   : > { %2593 = vmatpush3.msra.mxu1 %v2085_v26  ;;  %2550 = vmatprep.subr.mxu0 %v2068_v27  ;;  %v2097_v26 = vld [vmem:[%s3539_s3 + $0x328] sm:$0xff] }
  0x6a   : > { %2534 = vmatmul.mubr.f32.gmra.mxu1 %v3255_v28  ;;  %2594 = vmatprep.subr.mxu1 %v2084_v29 }
  0x6b   : > { %2551 = vmatpush3.msra.mxu0 %v2068_v27  ;;  %2595 = vmatpush3.msra.mxu1 %v2084_v29  ;;  %v2113_v27 = vld [vmem:[%s3539_s3 + $0x3a8] sm:$0xff]  ;;  %v2096_v29 = vld [vmem:[%s3539_s3 + $0x320] sm:$0xff] }
  0x6c   : > { %2552 = vmatprep.subr.mxu0 %v2067_v34  ;;  %2596 = vmatprep.subr.mxu1 %v2083_v35 }
  0x6d   : > { %2553 = vmatpush3.msra.mxu0 %v2067_v34  ;;  %2597 = vmatpush3.msra.mxu1 %v2083_v35  ;;  %v2112_v34 = vld [vmem:[%s3539_s3 + $0x3a0] sm:$0xff]  ;;  %v2095_v35 = vld [vmem:[%s3539_s3 + $0x318] sm:$0xff] }
  0x6e   : > { %2554 = vmatprep.subr.mxu0 %v2066_v39  ;;  %2598 = vmatprep.subr.mxu1 %v2082_v40 }
  0x6f   : > { %2555 = vmatpush3.msra.mxu0 %v2066_v39  ;;  %2599 = vmatpush3.msra.mxu1 %v2082_v40  ;;  %v2111_v39 = vld [vmem:[%s3539_s3 + $0x398] sm:$0xff]  ;;  %v2094_v40 = vld [vmem:[%s3539_s3 + $0x310] sm:$0xff] }
  0x70   : > { %2556 = vmatprep.subr.mxu0 %v2065_v42  ;;  %2600 = vmatprep.subr.mxu1 %v2081_v43 }
  0x71   : > { %2557 = vmatpush3.msra.mxu0 %v2065_v42  ;;  %2601 = vmatpush3.msra.mxu1 %v2081_v43  ;;  %v2110_v42 = vld [vmem:[%s3539_s3 + $0x390] sm:$0xff]  ;;  %v2093_v43 = vld [vmem:[%s3539_s3 + $0x308] sm:$0xff] }
  0x72   : > { %2558 = vmatprep.subr.mxu0 %v2064_v45  ;;  %2602 = vmatprep.subr.mxu1 %v2080_v46 }
  0x73   : > { %2559 = vmatpush3.msra.mxu0 %v2064_v45  ;;  %2603 = vmatpush3.msra.mxu1 %v2080_v46  ;;  %v2109_v45 = vld [vmem:[%s3539_s3 + $0x388] sm:$0xff]  ;;  %v2092_v46 = vld [vmem:[%s3539_s3 + $0x300] sm:$0xff] }
  0x74   : > { %2560 = vmatprep.subr.mxu0 %v2063_v49  ;;  %2604 = vmatprep.subr.mxu1 %v2079_v50 }
  0x75   : > { %2561 = vmatpush3.msra.mxu0 %v2063_v49  ;;  %2605 = vmatpush3.msra.mxu1 %v2079_v50  ;;  %v2108_v49 = vld [vmem:[%s3539_s3 + $0x380] sm:$0xff]  ;;  %v2139_v50 = vld [vmem:[%s3539_s3 + $0x478] sm:$0xff] }
  0x76   : > { %2562 = vmatprep.subr.mxu0 %v2062_v51  ;;  %2606 = vmatprep.subr.mxu1 %v2078_v52 }
  0x77   : > { %2563 = vmatpush3.msra.mxu0 %v2062_v51  ;;  %2607 = vmatpush3.msra.mxu1 %v2078_v52  ;;  %v2138_v51 = vld [vmem:[%s3539_s3 + $0x470] sm:$0xff] }
  0x78   : > { %2564 = vmatprep.subr.mxu0 %v2061_v53  ;;  %2608 = vmatprep.subr.mxu1 %v2077_v55 }
  0x79   : > { %2565 = vmatpush3.msra.mxu0 %v2061_v53  ;;  %2609 = vmatpush3.msra.mxu1 %v2077_v55 }
  0x7a   : > { %2566 = vmatprep.subr.mxu0 %v2060_v56  ;;  %2610 = vmatprep.subr.mxu1 %v2076_v57 }
  0x7b   : > { %2567 = vmatpush3.msra.mxu0 %v2060_v56  ;;  %2568 = vmatprep.mubr.f32.mxu0 %v2950_v31  ;;  %v2105_v31 = vld [vmem:[%s3539_s3 + $0x368] sm:$0xff] }
  0x7c   : > { %2611 = vmatpush3.msra.mxu1 %v2076_v57  ;;  %2569 = vmatmul.mubr.f32.vlgmr.msra.gmra.mxu0 %v3027_v63 }
  0x7d   : > { %2612 = vmatprep.mubr.f32.mxu1 %v3156_v54  ;;  %2624 = vmatprep.subr.mxu0 %v2107_v58  ;;  %v2121_v54 = vld [vmem:[%s3539_s3 + $0x3e8] sm:$0xff] }
  0x7e   : > { %2668 = vmatprep.subr.mxu1 %v2123_v59  ;;  %2613 = vmatmul.mubr.f32.vlgmr.msra.gmra.mxu1 %v3179_v62 }
  0x7f   : > { %2625 = vmatpush3.msra.mxu0 %v2107_v58  ;;  %2669 = vmatpush3.msra.mxu1 %v2123_v59 }
  0x80   : > { %2626 = vmatprep.subr.mxu0 %v2106_v60  ;;  %2670 = vmatprep.subr.mxu1 %v2122_v61 }
  0x81   : > { %2571 = vmatprep.mubr.f32.mxu0 %v3037_v4  ;;  %2627 = vmatpush3.msra.mxu0 %v2106_v60 }
  0x82   : > { %2671 = vmatpush3.msra.mxu1 %v2122_v61  ;;  %2572 = vmatmul.mubr.f32.gmra.mxu0 %v3057_v15 }
  0x83   : > { %2628 = vmatprep.subr.mxu0 %v2105_v31  ;;  %2672 = vmatprep.subr.mxu1 %v2121_v54 }
  0x84   : > { %2615 = vmatprep.mubr.f32.mxu1 %v3183_v41  ;;  %2629 = vmatpush3.msra.mxu0 %v2105_v31 }
  0x85   : > { %2673 = vmatpush3.msra.mxu1 %v2121_v54  ;;  %2630 = vmatprep.subr.mxu0 %v2104_v0 }
  0x86   : > { %2616 = vmatmul.mubr.f32.gmra.mxu1 %v3206_v8  ;;  %2674 = vmatprep.subr.mxu1 %v2120_v1 }
  0x87   : > { %2574 = vmatprep.mubr.f32.mxu0 %v3064_v19  ;;  %2631 = vmatpush3.msra.mxu0 %v2104_v0 }
  0x88   : > { %2675 = vmatpush3.msra.mxu1 %v2120_v1  ;;  %2575 = vmatmul.mubr.f32.gmra.mxu0 %v3088_v30 }
  0x89   : > { %2632 = vmatprep.subr.mxu0 %v2103_v2  ;;  %2676 = vmatprep.subr.mxu1 %v2119_v3 }
  0x8a   : > { %2618 = vmatprep.mubr.f32.mxu1 %v3210_v9  ;;  %2633 = vmatpush3.msra.mxu0 %v2103_v2 }
  0x8b   : > { %2677 = vmatpush3.msra.mxu1 %v2119_v3  ;;  %2634 = vmatprep.subr.mxu0 %v2102_v5 }
  0x8c   : > { %2619 = vmatmul.mubr.f32.gmra.mxu1 %v3234_v20  ;;  %2678 = vmatprep.subr.mxu1 %v2118_v16 }
  0x8d   : > { %2577 = vmatprep.mubr.f32.mxu0 %v3096_v33  ;;  %2635 = vmatpush3.msra.mxu0 %v2102_v5 }
  0x8e   : > { %2679 = vmatpush3.msra.mxu1 %v2118_v16  ;;  %2578 = vmatmul.mubr.f32.gmra.mxu0 %v3222_v13 }
  0x8f   : > { %2636 = vmatprep.subr.mxu0 %v2101_v7  ;;  %2680 = vmatprep.subr.mxu1 %v2117_v23 }
  0x90   : > { %2621 = vmatprep.mubr.f32.mxu1 %v3238_v21  ;;  %2637 = vmatpush3.msra.mxu0 %v2101_v7 }
  0x91   : > { %2681 = vmatpush3.msra.mxu1 %v2117_v23  ;;  %2638 = vmatprep.subr.mxu0 %v2100_v10 }
  0x92   : > { %2622 = vmatmul.mubr.f32.gmra.mxu1 %v3372_v11  ;;  %2682 = vmatprep.subr.mxu1 %v2116_v12 }
  0x93   : > { %2639 = vmatpush3.msra.mxu0 %v2100_v10  ;;  %2683 = vmatpush3.msra.mxu1 %v2116_v12 }
  0x94   : > { %2640 = vmatprep.subr.mxu0 %v2099_v14  ;;  %2684 = vmatprep.subr.mxu1 %v2115_v17 }
  0x95   : > { %2641 = vmatpush3.msra.mxu0 %v2099_v14  ;;  %2685 = vmatpush3.msra.mxu1 %v2115_v17 }
  0x96   : > { %2642 = vmatprep.subr.mxu0 %v2098_v22  ;;  %2686 = vmatprep.subr.mxu1 %v2114_v25 }
  0x97   : > { %2643 = vmatpush3.msra.mxu0 %v2098_v22  ;;  %2687 = vmatpush3.msra.mxu1 %v2114_v25 }
  0x98   : > { %2644 = vmatprep.subr.mxu0 %v2097_v26  ;;  %2688 = vmatprep.subr.mxu1 %v2113_v27 }
  0x99   : > { %2645 = vmatpush3.msra.mxu0 %v2097_v26  ;;  %2689 = vmatpush3.msra.mxu1 %v2113_v27 }
  0x9a   : > { %2646 = vmatprep.subr.mxu0 %v2096_v29  ;;  %2690 = vmatprep.subr.mxu1 %v2112_v34 }
  0x9b   : > { %2647 = vmatpush3.msra.mxu0 %v2096_v29  ;;  %2691 = vmatpush3.msra.mxu1 %v2112_v34 }
  0x9c   : > { %2648 = vmatprep.subr.mxu0 %v2095_v35  ;;  %2692 = vmatprep.subr.mxu1 %v2111_v39 }
  0x9d   : > { %2649 = vmatpush3.msra.mxu0 %v2095_v35  ;;  %2693 = vmatpush3.msra.mxu1 %v2111_v39 }
  0x9e   : > { %2650 = vmatprep.subr.mxu0 %v2094_v40  ;;  %2694 = vmatprep.subr.mxu1 %v2110_v42 }
  0x9f   : > { %2651 = vmatpush3.msra.mxu0 %v2094_v40  ;;  %2695 = vmatpush3.msra.mxu1 %v2110_v42 }
  0xa0   : > { %2652 = vmatprep.subr.mxu0 %v2093_v43  ;;  %2696 = vmatprep.subr.mxu1 %v2109_v45 }
  0xa1   : > { %2653 = vmatpush3.msra.mxu0 %v2093_v43  ;;  %2697 = vmatpush3.msra.mxu1 %v2109_v45 }
  0xa2   : > { %2654 = vmatprep.subr.mxu0 %v2092_v46  ;;  %2698 = vmatprep.subr.mxu1 %v2108_v49 }
  0xa3   : > { %2655 = vmatpush3.msra.mxu0 %v2092_v46  ;;  %2656 = vmatprep.mubr.f32.mxu0 %v3062_v18  ;;  %v2137_v18 = vld [vmem:[%s3539_s3 + $0x468] sm:$0xff] }
  0xa4   : > { %2699 = vmatpush3.msra.mxu1 %v2108_v49  ;;  %2657 = vmatmul.mubr.f32.vlgmr.msra.gmra.mxu0 %v3075_v24  ;;  %v2132_v24 = vld [vmem:[%s3539_s3 + $0x440] sm:$0xff] }
  0xa5   : > { %2700 = vmatprep.mubr.f32.mxu1 %v3027_v63  ;;  %2712 = vmatprep.subr.mxu0 %v2139_v50  ;;  %v2136_v63 = vld [vmem:[%s3539_s3 + $0x460] sm:$0xff] }
  0xa6   : > { %2756 = vmatprep.subr.mxu1 %v2139_v50  ;;  %2701 = vmatmul.mubr.f32.vlgmr.msra.gmra.mxu1 %v3037_v4  ;;  %v2135_v4 = vld [vmem:[%s3539_s3 + $0x458] sm:$0xff] }
  0xa7   : > { %2713 = vmatpush3.msra.mxu0 %v2139_v50  ;;  %2772 = vmatpush3.msra.mxu1 %v2139_v50 }
  0xa8   : > { %2714 = vmatprep.subr.mxu0 %v2138_v51  ;;  %2757 = vmatprep.subr.mxu1 %v2138_v51 }
  0xa9   : > { %2659 = vmatprep.mubr.f32.mxu0 %v3094_v32  ;;  %2715 = vmatpush3.msra.mxu0 %v2138_v51  ;;  %v2129_v32 = vld [vmem:[%s3539_s3 + $0x428] sm:$0xff] }
  0xaa   : > { %2773 = vmatpush3.msra.mxu1 %v2138_v51  ;;  %2660 = vmatmul.mubr.f32.gmra.mxu0 %v3106_v38  ;;  %v2126_v38 = vld [vmem:[%s3539_s3 + $0x410] sm:$0xff] }
  0xab   : > { %2716 = vmatprep.subr.mxu0 %v2137_v18  ;;  %2758 = vmatprep.subr.mxu1 %v2137_v18 }
  0xac   : > { %2703 = vmatprep.mubr.f32.mxu1 %v3057_v15  ;;  %2717 = vmatpush3.msra.mxu0 %v2137_v18  ;;  %v2134_v15 = vld [vmem:[%s3539_s3 + $0x450] sm:$0xff] }
  0xad   : > { %2774 = vmatpush3.msra.mxu1 %v2137_v18  ;;  %2718 = vmatprep.subr.mxu0 %v2136_v63 }
  0xae   : > { %2704 = vmatmul.mubr.f32.gmra.mxu1 %v3064_v19  ;;  %2759 = vmatprep.subr.mxu1 %v2136_v63  ;;  %v2133_v19 = vld [vmem:[%s3539_s3 + $0x448] sm:$0xff] }
  0xaf   : > { %2662 = vmatprep.mubr.f32.mxu0 %v3122_v44  ;;  %2719 = vmatpush3.msra.mxu0 %v2136_v63  ;;  %v2125_v44 = vld [vmem:[%s3539_s3 + $0x408] sm:$0xff] }
  0xb0   : > { %2775 = vmatpush3.msra.mxu1 %v2136_v63  ;;  %2663 = vmatmul.mubr.f32.gmra.mxu0 %v3132_v47  ;;  %v2124_v47 = vld [vmem:[%s3539_s3 + $0x400] sm:$0xff] }
  0xb1   : > { %2720 = vmatprep.subr.mxu0 %v2135_v4  ;;  %2760 = vmatprep.subr.mxu1 %v2135_v4 }
  0xb2   : > { %2706 = vmatprep.mubr.f32.mxu1 %v3088_v30  ;;  %2721 = vmatpush3.msra.mxu0 %v2135_v4  ;;  %v2131_v30 = vld [vmem:[%s3539_s3 + $0x438] sm:$0xff] }
  0xb3   : > { %2776 = vmatpush3.msra.mxu1 %v2135_v4  ;;  %2722 = vmatprep.subr.mxu0 %v2134_v15 }
  0xb4   : > { %2707 = vmatmul.mubr.f32.gmra.mxu1 %v3096_v33  ;;  %2761 = vmatprep.subr.mxu1 %v2134_v15  ;;  %v2127_v33 = vld [vmem:[%s3539_s3 + $0x418] sm:$0xff] }
  0xb5   : > { %2665 = vmatprep.mubr.f32.mxu0 %v3255_v28  ;;  %2723 = vmatpush3.msra.mxu0 %v2134_v15 }
  0xb6   : > { %2777 = vmatpush3.msra.mxu1 %v2134_v15  ;;  %2666 = vmatmul.mubr.f32.gmra.mxu0 %v2965_v37  ;;  %v2130_v37 = vld [vmem:[%s3539_s3 + $0x430] sm:$0xff] }
  0xb7   : > { %2724 = vmatprep.subr.mxu0 %v2133_v19  ;;  %2762 = vmatprep.subr.mxu1 %v2133_v19 }
  0xb8   : > { %2709 = vmatprep.mubr.f32.mxu1 %v3222_v13  ;;  %2725 = vmatpush3.msra.mxu0 %v2133_v19 }
  0xb9   : > { %2778 = vmatpush3.msra.mxu1 %v2133_v19  ;;  %2726 = vmatprep.subr.mxu0 %v2132_v24 }
  0xba   : > { %2710 = vmatmul.mubr.f32.gmra.mxu1 %v2805_v36  ;;  %2763 = vmatprep.subr.mxu1 %v2132_v24  ;;  %v2128_v36 = vld [vmem:[%s3539_s3 + $0x420] sm:$0xff] }
  0xbb   : > { %2727 = vmatpush3.msra.mxu0 %v2132_v24  ;;  %2779 = vmatpush3.msra.mxu1 %v2132_v24 }
  0xbc   : > { %2728 = vmatprep.subr.mxu0 %v2131_v30  ;;  %2764 = vmatprep.subr.mxu1 %v2131_v30 }
  0xbd   : > { %2729 = vmatpush3.msra.mxu0 %v2131_v30  ;;  %2780 = vmatpush3.msra.mxu1 %v2131_v30 }
  0xbe   : > { %2730 = vmatprep.subr.mxu0 %v2130_v37  ;;  %2765 = vmatprep.subr.mxu1 %v2130_v37 }
  0xbf   : > { %2731 = vmatpush3.msra.mxu0 %v2130_v37  ;;  %2781 = vmatpush3.msra.mxu1 %v2130_v37 }
  0xc0   : > { %2732 = vmatprep.subr.mxu0 %v2129_v32  ;;  %2766 = vmatprep.subr.mxu1 %v2129_v32 }
  0xc1   : > { %2733 = vmatpush3.msra.mxu0 %v2129_v32  ;;  %2782 = vmatpush3.msra.mxu1 %v2129_v32 }
  0xc2   : > { %2734 = vmatprep.subr.mxu0 %v2128_v36  ;;  %2767 = vmatprep.subr.mxu1 %v2128_v36 }
  0xc3   : > { %2735 = vmatpush3.msra.mxu0 %v2128_v36  ;;  %2783 = vmatpush3.msra.mxu1 %v2128_v36 }
  0xc4   : > { %2736 = vmatprep.subr.mxu0 %v2127_v33  ;;  %2768 = vmatprep.subr.mxu1 %v2127_v33 }
  0xc5   : > { %2737 = vmatpush3.msra.mxu0 %v2127_v33  ;;  %2784 = vmatpush3.msra.mxu1 %v2127_v33 }
  0xc6   : > { %2738 = vmatprep.subr.mxu0 %v2126_v38  ;;  %2769 = vmatprep.subr.mxu1 %v2126_v38 }
  0xc7   : > { %2739 = vmatpush3.msra.mxu0 %v2126_v38  ;;  %2785 = vmatpush3.msra.mxu1 %v2126_v38 }
  0xc8   : > { %2740 = vmatprep.subr.mxu0 %v2125_v44  ;;  %2770 = vmatprep.subr.mxu1 %v2125_v44 }
  0xc9   : > { %2741 = vmatpush3.msra.mxu0 %v2125_v44  ;;  %2786 = vmatpush3.msra.mxu1 %v2125_v44 }
  0xca   : > { %2742 = vmatprep.subr.mxu0 %v2124_v47  ;;  %2771 = vmatprep.subr.mxu1 %v2124_v47 }
  0xcb   : > { %2743 = vmatpush3.msra.mxu0 %v2124_v47  ;;  %2787 = vmatpush3.msra.mxu1 %v2124_v47 }
  0xcc   : > { %2744 = vmatprep.mubr.f32.mxu0 %v3179_v62  ;;  %2750 = vmatprep.mubr.f32.mxu1 %v3234_v20 }
  0xcd   : > { %2745 = vmatmul.mubr.f32.vlgmr.msra.gmra.mxu0 %v3183_v41  ;;  %2751 = vmatmul.mubr.f32.vlgmr.msra.gmra.mxu1 %v3238_v21 }
  0xce   : > { %2747 = vmatprep.mubr.f32.mxu0 %v3206_v8  ;;  %2753 = vmatprep.mubr.f32.mxu1 %v3372_v11 }
  0xd1   : > { %2748 = vmatmul.mubr.f32.gmra.mxu0 %v3210_v9  ;;  %2754 = vmatmul.mubr.f32.gmra.mxu1 %v3137_v48 }
  0xed   : > { %v2394_v13 = vpop.f32.mrf.mxu0  ;;  %v2438_v28 = vpop.f32.mrf.mxu1 }
  0xee   : > { %v641_v19 = vadd.f32 %v2438_v28, %v2394_v13 }
  0xef   : > { %v530_v52 = vpop.f32.mrf.mxu0  ;;  %v635_v53 = vpop.f32.mrf.mxu1 }
  0xf0   : > { %v636_v30 = vadd.f32 %v635_v53, %v530_v52 }
 0x102   : > { %v2397_v55 = vpop.f32.mrf.mxu0  ;;  %v2441_v62 = vpop.f32.mrf.mxu1 }
 0x103   : > { %v651_v47 = vadd.f32 %v2441_v62, %v2397_v55 }
 0x104   : > { %v540_v56 = vpop.f32.mrf.mxu0  ;;  %v645_v20 = vpop.f32.mrf.mxu1 }
 0x108   : > { %v2400_v57 = vpop.f32.mrf.mxu0  ;;  %v2444_v41 = vpop.f32.mrf.mxu1 }
 0x109   : > { %v661_v24 = vadd.f32 %v2444_v41, %v2400_v57 }
 0x10a   : > { %v550_v58 = vpop.f32.mrf.mxu0  ;;  %v655_v21 = vpop.f32.mrf.mxu1 }
 0x10b   : > { %v656_v36 = vadd.f32 %v655_v21, %v550_v58 }
 0x10e   : > { %v2403_v59 = vpop.f32.mrf.mxu0  ;;  %v2447_v8 = vpop.f32.mrf.mxu1 }
 0x110   : > { %v560_v60 = vpop.f32.mrf.mxu0  ;;  %v665_v61 = vpop.f32.mrf.mxu1 }
 0x111   : > { %v666_v41 = vadd.f32 %v665_v61, %v560_v60 }
 0x114   : > { %v2482_v31 = vpop.f32.mrf.mxu0 }
 0x115   : > { %v838_v33 = vadd.f32 %v2482_v31, %v641_v19 }
 0x116   : > { %v2526_v9 = vpop.f32.mrf.mxu1  ;;  %v798_v54 = vpop.f32.mrf.mxu0 }
 0x117   : > { %v837_v44 = vadd.f32 %v798_v54, %v636_v30  ;;  %v1040_v57 = vadd.f32 %v2526_v9, %v838_v33 }
 0x118   : > { %v1000_v48 = vpop.f32.mrf.mxu1 }
 0x11a   : > { %v2485_v0 = vpop.f32.mrf.mxu0 }
 0x11b   : > { %v840_v52 = vadd.f32 %v2485_v0, %v651_v47 }
 0x11c   : > { %v808_v2 = vpop.f32.mrf.mxu0 }
 0x11e   : > { %v2529_v1 = vpop.f32.mrf.mxu1 }
 0x11f   : > { %v1042_v62 = vadd.f32 %v2529_v1, %v840_v52 }
 0x120   : > { %v1010_v3 = vpop.f32.mrf.mxu1  ;;  %v2488_v5 = vpop.f32.mrf.mxu0 }
 0x121   : > { %v842_v38 = vadd.f32 %v2488_v5, %v661_v24 }
 0x122   : > { %v818_v6 = vpop.f32.mrf.mxu0 }
 0x124   : > { %v2532_v16 = vpop.f32.mrf.mxu1 }
 0x125   : > { %v1044_v53 = vadd.f32 %v2532_v16, %v842_v38 }
 0x126   : > { %v1020_v7 = vpop.f32.mrf.mxu1  ;;  %v2491_v23 = vpop.f32.mrf.mxu0 }
 0x128   : > { %v828_v11 = vpop.f32.mrf.mxu0 }
 0x129   : > { %v843_v31 = vadd.f32 %v828_v11, %v666_v41 }
 0x12a   : > { %v2535_v10 = vpop.f32.mrf.mxu1 }
 0x12c   : > { %v1030_v12 = vpop.f32.mrf.mxu1 }
 0x13c   : > { %v2570_v14 = vpop.f32.mrf.mxu0 }
 0x13d   : > { %v1170_v5 = vadd.f32 %v2570_v14, %v1040_v57 }
 0x13e   : > { %v2614_v17 = vpop.f32.mrf.mxu1  ;;  %v1130_v22 = vpop.f32.mrf.mxu0 }
 0x140   : > { %v1300_v25 = vpop.f32.mrf.mxu1 }
 0x142   : > { %v2573_v26 = vpop.f32.mrf.mxu0 }
 0x143   : > { %v1172_v60 = vadd.f32 %v2573_v26, %v1042_v62 }
 0x144   : > { %v1140_v29 = vpop.f32.mrf.mxu0 }
 0x146   : > { %v3499_v27 = vpop.f32.mrf.mxu1 }
 0x147   : > { %3543 = vst [vmem:[#allocation3_spill] sm:$0xff] %v3499_v27  ;;  %v646_v27 = vadd.f32 %v645_v20, %v540_v56 }
 0x148   : > { %v3501_v34 = vpop.f32.mrf.mxu1  ;;  %v2576_v35 = vpop.f32.mrf.mxu0 }
 0x149   : > { %3544 = vst [vmem:[#allocation4_spill] sm:$0xff] %v3501_v34  ;;  %v841_v34 = vadd.f32 %v818_v6, %v656_v36  ;;  %v839_v21 = vadd.f32 %v808_v2, %v646_v27  ;;  %v1174_v24 = vadd.f32 %v2576_v35, %v1044_v53 }
 0x14a   : > { %v1150_v40 = vpop.f32.mrf.mxu0 }
 0x14b   : > { %v1043_v19 = vadd.f32 %v1020_v7, %v841_v34  ;;  %v1041_v56 = vadd.f32 %v1010_v3, %v839_v21 }
 0x14c   : > { %v2620_v39 = vpop.f32.mrf.mxu1 }
 0x14d   : > { %v1173_v6 = vadd.f32 %v1150_v40, %v1043_v19  ;;  %v1344_v61 = vadd.f32 %v2620_v39, %v1174_v24  ;;  %v1171_v0 = vadd.f32 %v1140_v29, %v1041_v56 }
 0x14e   : > { %v1320_v42 = vpop.f32.mrf.mxu1  ;;  %v2579_v43 = vpop.f32.mrf.mxu0  ;;  %v3547_v27 = vld [vmem:[#allocation3_spill] sm:$0xff] }
 0x14f   : > { %v1343_v7 = vadd.f32 %v1320_v42, %v1173_v6  ;;  %v1342_v1 = vadd.f32 %v3547_v27, %v1172_v60 }
 0x150   : > { %v1160_v46 = vpop.f32.mrf.mxu0  ;;  %v3548_v3 = vld [vmem:[#allocation4_spill] sm:$0xff] }
 0x152   : > { %v2623_v45 = vpop.f32.mrf.mxu1 }
 0x154   : > { %v1330_v49 = vpop.f32.mrf.mxu1 }
 0x164   : > { %v2658_v50 = vpop.f32.mrf.mxu0 }
 0x166   : > { %v2702_v51 = vpop.f32.mrf.mxu1  ;;  %v1503_v18 = vpop.f32.mrf.mxu0 }
 0x168   : > { %v1633_v63 = vpop.f32.mrf.mxu1 }
 0x16a   : > { %v2661_v4 = vpop.f32.mrf.mxu0 }
 0x16b   : > { %v1545_v29 = vadd.f32 %v2661_v4, %v1342_v1 }
 0x16c   : > { %v1513_v37 = vpop.f32.mrf.mxu0 }
 0x16e   : > { %v3503_v15 = vpop.f32.mrf.mxu1 }
 0x16f   : > { %3545 = vst [vmem:[#allocation5_spill] sm:$0xff] %v3503_v15  ;;  %v671_v15 = vadd.f32 %v2447_v8, %v2403_v59  ;;  %v1045_v59 = vadd.f32 %v1030_v12, %v843_v31  ;;  %v1340_v8 = vadd.f32 %v2614_v17, %v1170_v5 }
 0x170   : > { %v3505_v32 = vpop.f32.mrf.mxu1  ;;  %v2664_v13 = vpop.f32.mrf.mxu0 }
 0x171   : > { %3546 = vst [vmem:[#allocation6_spill] sm:$0xff] %v3505_v32  ;;  %v1039_v32 = vadd.f32 %v1000_v48, %v837_v44  ;;  %v844_v58 = vadd.f32 %v2491_v23, %v671_v15  ;;  %v1175_v23 = vadd.f32 %v1160_v46, %v1045_v59  ;;  %v1543_v11 = vadd.f32 %v2658_v50, %v1340_v8 }
 0x172   : > { %v1523_v54 = vpop.f32.mrf.mxu0  ;;  %v1547_v14 = vadd.f32 %v2664_v13, %v1344_v61 }
 0x173   : > { %v1169_v30 = vadd.f32 %v1130_v22, %v1039_v32  ;;  %v1046_v20 = vadd.f32 %v2535_v10, %v844_v58  ;;  %v1546_v34 = vadd.f32 %v1523_v54, %v1343_v7  ;;  %v1341_v10 = vadd.f32 %v3548_v3, %v1171_v0 }
 0x174   : > { %v2708_v28 = vpop.f32.mrf.mxu1  ;;  %v1345_v35 = vadd.f32 %v1330_v49, %v1175_v23 }
 0x175   : > { %v1339_v9 = vadd.f32 %v1300_v25, %v1169_v30  ;;  %v1176_v48 = vadd.f32 %v2579_v43, %v1046_v20  ;;  %v1673_v25 = vadd.f32 %v2702_v51, %v1543_v11  ;;  %v1677_v39 = vadd.f32 %v2708_v28, %v1547_v14 }
 0x176   : > { %v1653_v55 = vpop.f32.mrf.mxu1  ;;  %v2667_v2 = vpop.f32.mrf.mxu0  ;;  %v1544_v43 = vadd.f32 %v1513_v37, %v1341_v10  ;;  %v3549_v15 = vld [vmem:[#allocation5_spill] sm:$0xff] }
 0x177   : > { %v1542_v22 = vadd.f32 %v1503_v18, %v1339_v9  ;;  %v1346_v12 = vadd.f32 %v2623_v45, %v1176_v48  ;;  %v1676_v45 = vadd.f32 %v1653_v55, %v1546_v34  ;;  %v1675_v37 = vadd.f32 %v3549_v15, %v1545_v29 }
 0x178   : > { %v1533_v17 = vpop.f32.mrf.mxu0  ;;  %v3550_v47 = vld [vmem:[#allocation6_spill] sm:$0xff] }
 0x179   : > { %v1672_v40 = vadd.f32 %v1633_v63, %v1542_v22  ;;  %v1549_v42 = vadd.f32 %v2667_v2, %v1346_v12  ;;  %v1548_v18 = vadd.f32 %v1533_v17, %v1345_v35  ;;  %v1674_v13 = vadd.f32 %v3550_v47, %v1544_v43 }
 0x17a   : > { %v2711_v16 = vpop.f32.mrf.mxu1 }
 0x17b   : > { %v1679_v33 = vadd.f32 %v2711_v16, %v1549_v42 }
 0x17c   : > { %v1663_v26 = vpop.f32.mrf.mxu1 }
 0x17d   : > { %v1678_v28 = vadd.f32 %v1663_v26, %v1548_v18 }
 0x18d   : > { %v2746_v46 = vpop.f32.mrf.mxu0  ;;  %v2752_v50 = vpop.f32.mrf.mxu1 }
 0x18e   : > { %v1843_v49 = vadd.f32 %v2746_v46, %v1673_v25  ;;  %v1847_v51 = vadd.f32 %v2752_v50, %v1677_v39 }
 0x18f   : > { %v1803_v4 = vpop.f32.mrf.mxu0  ;;  %v1823_v63 = vpop.f32.mrf.mxu1 }
 0x190   : > { %1851 = vst [vmem:[%s3514_s7 + $0x8] sm:$0xff] %v1843_v49  ;;  %1855 = vst [vmem:[%s3514_s7 + $0x28] sm:$0xff] %v1847_v51  ;;  %v1842_v32 = vadd.f32 %v1803_v4, %v1672_v40  ;;  %v1846_v36 = vadd.f32 %v1823_v63, %v1676_v45  ;;  %v1867_v58 = vmul.f32 %v1843_v49, %v1843_v49 }
 0x191   : > { %v2749_v38 = vpop.f32.mrf.mxu0  ;;  %v2755_v44 = vpop.f32.mrf.mxu1  ;;  %v1871_v8 = vmul.f32 %v1847_v51, %v1847_v51 }
 0x192   : > { %1850 = vst [vmem:[%s3514_s7] sm:$0xff] %v1842_v32  ;;  %v1866_v41 = vmul.f32 %v1842_v32, %v1842_v32  ;;  %1854 = vst [vmem:[%s3514_s7 + $0x20] sm:$0xff] %v1846_v36  ;;  %v1845_v57 = vadd.f32 %v2749_v38, %v1675_v37  ;;  %v1849_v52 = vadd.f32 %v2755_v44, %v1679_v33 }
 0x193   : > { %v1813_v53 = vpop.f32.mrf.mxu0  ;;  %v1833_v21 = vpop.f32.mrf.mxu1  ;;  %v1858_v19 = vadd.f32 %v1843_v49, %v1842_v32  ;;  %v1870_v56 = vmul.f32 %v1846_v36, %v1846_v36 }
 0x194   : > { %1853 = vst [vmem:[%s3514_s7 + $0x18] sm:$0xff] %v1845_v57  ;;  %v1844_v31 = vadd.f32 %v1813_v53, %v1674_v13  ;;  %v1848_v5 = vadd.f32 %v1833_v21, %v1678_v28  ;;  %1857 = vst [vmem:[%s3514_s7 + $0x38] sm:$0xff] %v1849_v52  ;;  %v1874_v24 = vadd.f32 %v1867_v58, %v1866_v41 }
 0x195   : > { %v1869_v55 = vmul.f32 %v1845_v57, %v1845_v57  ;;  %v1873_v2 = vmul.f32 %v1849_v52, %v1849_v52 }
 0x196   : > { %1852 = vst [vmem:[%s3514_s7 + $0x10] sm:$0xff] %v1844_v31  ;;  %v1859_v30 = vadd.f32 %v1858_v19, %v1844_v31  ;;  %v1868_v54 = vmul.f32 %v1844_v31, %v1844_v31  ;;  %1856 = vst [vmem:[%s3514_s7 + $0x30] sm:$0xff] %v1848_v5  ;;  %v1872_v0 = vmul.f32 %v1848_v5, %v1848_v5 }
 0x198   : > { %v1860_v62 = vadd.f32 %v1859_v30, %v1845_v57  ;;  %v1875_v6 = vadd.f32 %v1874_v24, %v1868_v54 }
 0x19a   : > { %v1876_v20 = vadd.f32 %v1875_v6, %v1869_v55  ;;  %v1861_v59 = vadd.f32 %v1860_v62, %v1846_v36 }
 0x19c   : > { %v1862_v60 = vadd.f32 %v1861_v59, %v1847_v51  ;;  %v1877_v61 = vadd.f32 %v1876_v20, %v1870_v56 }
 0x19e   : > { %v1863_v9 = vadd.f32 %v1862_v60, %v1848_v5  ;;  %v1878_v48 = vadd.f32 %v1877_v61, %v1871_v8 }
 0x1a0   : > { %v1864_v16 = vadd.f32 %v1863_v9, %v1849_v52  ;;  %v1879_v7 = vadd.f32 %v1878_v48, %v1872_v0 }
 0x1a2   : > { %1865 = vst [vmem:[%s268_s10] sm:$0xff] %v1864_v16  ;;  %v1880_v23 = vadd.f32 %v1879_v7, %v1873_v2 }
 0x1a4   : > { %1881 = vst [vmem:[%s272_s13] sm:$0xff] %v1880_v23 }
 0x1a5 PF: > { %s17_s21 = sadd.s32 1, %s2803_s21  }
 0x1a6   : > { %p14_p4 = scmp.ge.s32.totalorder %s17_s21, 4  }
 0x1a8   :  { %16 = sbr.rel (!%p14_p4) target bundleno = 1 (0x1), region = 100 }

</bundles_post_ra>
